<compile_context>
chip_gen: v6e
topology: v6e:2x2x1
jax: 0.10.0
libtpu: 0.0.40
codegen_flags: <defaults>
</compile_context>

<pallas_src>
import functools
import numpy as np
import jax
import jax.numpy as jnp
from jax.experimental import pallas as pl
from jax.experimental.pallas import tpu as pltpu

LN_EPS = 1e-5  # PyTorch LayerNorm default


def _layer_norm(x, gamma, beta):
    mu = jnp.mean(x, axis=-1, keepdims=True)
    var = jnp.mean((x - mu) ** 2, axis=-1, keepdims=True)
    return (x - mu) * jax.lax.rsqrt(var + LN_EPS) * gamma + beta


# ---------------- fused kernel ----------------

def fused_forward_kernel(nhead,
                         x_ref, emb_w_ref, emb_b_ref, pe_ref,
                         wqkv_ref, bqkv_ref, wo_ref, bo_ref,
                         g1_ref, be1_ref, w1_ref, b1_ref, w2_ref, b2_ref,
                         g2_ref, be2_ref, dec_w_ref, dec_b_ref,
                         out_ref, h_scr):
    """Grid axis 0 = layer index.  h_scr (B,S,D) persists across grid steps."""
    l = pl.program_id(0)
    B, S, D = h_scr.shape
    H = nhead
    Dh = D // H
    scale = 1.0 / float(np.sqrt(Dh))

    # ---- input embedding + positional encoding (first grid step only) ----
    @pl.when(l == 0)
    def _embed():
        Bx, Sx, In = x_ref.shape
        x2d = x_ref[...].reshape(Bx * Sx, In)
        h = jnp.dot(x2d, emb_w_ref[...], preferred_element_type=jnp.float32) + emb_b_ref[...]
        h_scr[...] = h.reshape(Bx, Sx, D) + pe_ref[...][None, :, :]

    x3 = h_scr[...]                                   # (B, S, D)
    x2d = x3.reshape(B * S, D)

    # ---- fused Q|K|V projection for the whole batch ----
    qkv = jnp.dot(x2d, wqkv_ref[0], preferred_element_type=jnp.float32) + bqkv_ref[0]
    qkv3 = qkv.reshape(B, S, 3 * D)

    # ---- multi-head self-attention (batched over B; heads unrolled, H small) ----
    wo = wo_ref[0]
    attn2d = jnp.zeros((B * S, D), jnp.float32)
    for h in range(H):
        qh = qkv3[:, :, h * Dh:(h + 1) * Dh]                          # (B, S, Dh)
        kh = qkv3[:, :, D + h * Dh:D + (h + 1) * Dh]
        vh = qkv3[:, :, 2 * D + h * Dh:2 * D + (h + 1) * Dh]
        s = jnp.einsum('bqd,bkd->bqk', qh, kh,
                       preferred_element_type=jnp.float32) * scale    # (B, S, S)
        s = s - jnp.max(s, axis=-1, keepdims=True)
        p = jnp.exp(s)
        p = p * pl.reciprocal(jnp.sum(p, axis=-1, keepdims=True), approx=True)
        ctx = jnp.einsum('bqk,bkd->bqd', p, vh,
                         preferred_element_type=jnp.float32)          # (B, S, Dh)
        # concat_h(ctx_h) @ Wo  ==  sum_h ctx_h @ Wo[h*Dh:(h+1)*Dh, :]  (no lane concat)
        attn2d = attn2d + jnp.dot(ctx.reshape(B * S, Dh),
                                  wo[h * Dh:(h + 1) * Dh, :],
                                  preferred_element_type=jnp.float32)
    attn2d = attn2d + bo_ref[0]

    # ---- residual + LayerNorm 1 (post-norm) ----
    y = _layer_norm(x2d + attn2d, g1_ref[0], be1_ref[0])

    # ---- feed-forward (D -> 4D -> D, ReLU) + residual + LayerNorm 2 ----
    h1 = jnp.maximum(
        jnp.dot(y, w1_ref[0], preferred_element_type=jnp.float32) + b1_ref[0], 0.0)
    f = jnp.dot(h1, w2_ref[0], preferred_element_type=jnp.float32) + b2_ref[0]
    z = _layer_norm(y + f, g2_ref[0], be2_ref[0])

    h_scr[...] = z.reshape(B, S, D)

    # ---- decoder on last timestep (last grid step only); lane-padded output ----
    @pl.when(l == pl.num_programs(0) - 1)
    def _decode():
        zl = z.reshape(B, S, D)[:, S - 1, :]                          # (B, D)
        out_ref[...] = (jnp.dot(zl, dec_w_ref[...], preferred_element_type=jnp.float32)
                        + dec_b_ref[...])


# ---------------- wrapper ----------------

def transformer_forward(x, params, nhead):
    B, S, In = x.shape
    D = params["emb_w"].shape[1]
    out_dim = params["dec_w"].shape[1]
    L = params["wqkv"].shape[0]
    out_pad = ((out_dim + 127) // 128) * 128          # lane-dense output slab

    dec_w_p = jnp.zeros((D, out_pad), jnp.float32).at[:, :out_dim].set(params["dec_w"])
    dec_b_p = jnp.zeros((1, out_pad), jnp.float32).at[:, :out_dim].set(params["dec_b"])
    pe = params["pe"][:S]

    kernel = functools.partial(fused_forward_kernel, nhead)

    in_specs = [
        pl.BlockSpec((B, S, In), lambda l: (0, 0, 0)),          # x
        pl.BlockSpec((In, D), lambda l: (0, 0)),                # emb_w
        pl.BlockSpec((1, D), lambda l: (0, 0)),                 # emb_b
        pl.BlockSpec((S, D), lambda l: (0, 0)),                 # pe
        pl.BlockSpec((1, D, 3 * D), lambda l: (l, 0, 0)),       # wqkv (stacked)
        pl.BlockSpec((1, 1, 3 * D), lambda l: (l, 0, 0)),       # bqkv
        pl.BlockSpec((1, D, D), lambda l: (l, 0, 0)),           # wo
        pl.BlockSpec((1, 1, D), lambda l: (l, 0, 0)),           # bo
        pl.BlockSpec((1, 1, D), lambda l: (l, 0, 0)),           # g1
        pl.BlockSpec((1, 1, D), lambda l: (l, 0, 0)),           # be1
        pl.BlockSpec((1, D, 4 * D), lambda l: (l, 0, 0)),       # w1
        pl.BlockSpec((1, 1, 4 * D), lambda l: (l, 0, 0)),       # b1
        pl.BlockSpec((1, 4 * D, D), lambda l: (l, 0, 0)),       # w2
        pl.BlockSpec((1, 1, D), lambda l: (l, 0, 0)),           # b2
        pl.BlockSpec((1, 1, D), lambda l: (l, 0, 0)),           # g2
        pl.BlockSpec((1, 1, D), lambda l: (l, 0, 0)),           # be2
        pl.BlockSpec((D, out_pad), lambda l: (0, 0)),           # dec_w (padded)
        pl.BlockSpec((1, out_pad), lambda l: (0, 0)),           # dec_b (padded)
    ]
    out_specs = pl.BlockSpec((B, out_pad), lambda l: (0, 0))

    out_p = pl.pallas_call(
        kernel,
        out_shape=jax.ShapeDtypeStruct((B, out_pad), jnp.float32),
        grid_spec=pltpu.PrefetchScalarGridSpec(
            num_scalar_prefetch=0,
            grid=(L,),
            in_specs=in_specs,
            out_specs=out_specs,
            scratch_shapes=[pltpu.VMEM((B, S, D), jnp.float32)]),
        compiler_params=pltpu.CompilerParams(
            dimension_semantics=("arbitrary",)),     # layer axis carries a dependency
    )(x, params["emb_w"], params["emb_b"], pe,
      params["wqkv"], params["bqkv"], params["wo"], params["bo"],
      params["g1"], params["be1"], params["w1"], params["b1"],
      params["w2"], params["b2"], params["g2"], params["be2"],
      dec_w_p, dec_b_p)

    return out_p[:, :out_dim]


# ---------------- pure-JAX reference (correctness check) ----------------

def transformer_forward_ref(x, params, nhead):
    B, S, _ = x.shape
    D = params["emb_w"].shape[1]
    H = nhead
    Dh = D // H
    h = x @ params["emb_w"] + params["emb_b"] + params["pe"][:S][None, :, :]
    L = params["wqkv"].shape[0]
    for l in range(L):
        qkv = h @ params["wqkv"][l] + params["bqkv"][l]
        q, k, v = qkv[..., :D], qkv[..., D:2 * D], qkv[..., 2 * D:]
        q = q.reshape(B, S, H, Dh).transpose(0, 2, 1, 3)
        k = k.reshape(B, S, H, Dh).transpose(0, 2, 1, 3)
        v = v.reshape(B, S, H, Dh).transpose(0, 2, 1, 3)
        s = jnp.einsum('bhqd,bhkd->bhqk', q, k) / np.sqrt(Dh)
        p = jax.nn.softmax(s, axis=-1)
        ctx = jnp.einsum('bhqk,bhkd->bhqd', p, v).transpose(0, 2, 1, 3).reshape(B, S, D)
        attn = ctx @ params["wo"][l] + params["bo"][l]
        y = _layer_norm(h + attn, params["g1"][l], params["be1"][l])
        f = jax.nn.relu(y @ params["w1"][l] + params["b1"][l]) @ params["w2"][l] + params["b2"][l]
        h = _layer_norm(y + f, params["g2"][l], params["be2"][l])
    return h[:, -1, :] @ params["dec_w"] + params["dec_b"]


# ---------------- deterministic parameter init ----------------

def init_params(key, input_dim, d_model, nhead, num_layers, output_dim, max_seq=64):
    assert d_model % nhead == 0
    keys = jax.random.split(key, 2 + num_layers)

    def lin(k, fan_in, fan_out):
        return jax.random.normal(k, (fan_in, fan_out), jnp.float32) * 0.05

    params = {
        "emb_w": lin(keys[0], input_dim, d_model),
        "emb_b": jnp.zeros((1, d_model), jnp.float32),
        "dec_w": lin(keys[1], d_model, output_dim),
        "dec_b": jnp.zeros((1, output_dim), jnp.float32),
    }

    # sinusoidal positional encoding — same formula as PositionalEncoding
    position = np.arange(max_seq, dtype=np.float32)[:, None]
    div_term = np.exp(np.arange(0, d_model, 2, dtype=np.float32) * (-np.log(10000.0) / d_model))
    pe = np.zeros((max_seq, d_model), np.float32)
    pe[:, 0::2] = np.sin(position * div_term)
    pe[:, 1::2] = np.cos(position * div_term)
    params["pe"] = jnp.asarray(pe)

    L, D = num_layers, d_model
    wqkv, wo, w1, w2 = [], [], [], []
    for l in range(num_layers):
        lk = jax.random.split(keys[2 + l], 6)
        wq, wk, wv = lin(lk[0], D, D), lin(lk[1], D, D), lin(lk[2], D, D)
        wqkv.append(jnp.concatenate([wq, wk, wv], axis=1))          # (D, 3D)
        wo.append(lin(lk[3], D, D))
        w1.append(lin(lk[4], D, 4 * D))
        w2.append(lin(lk[5], 4 * D, D))

    params.update(
        wqkv=jnp.stack(wqkv),                                       # (L, D, 3D)
        bqkv=jnp.zeros((L, 1, 3 * D), jnp.float32),
        wo=jnp.stack(wo),                                           # (L, D, D)
        bo=jnp.zeros((L, 1, D), jnp.float32),
        g1=jnp.ones((L, 1, D), jnp.float32),
        be1=jnp.zeros((L, 1, D), jnp.float32),
        w1=jnp.stack(w1),                                           # (L, D, 4D)
        b1=jnp.zeros((L, 1, 4 * D), jnp.float32),
        w2=jnp.stack(w2),                                           # (L, 4D, D)
        b2=jnp.zeros((L, 1, D), jnp.float32),
        g2=jnp.ones((L, 1, D), jnp.float32),
        be2=jnp.zeros((L, 1, D), jnp.float32),
    )
    return params


if __name__ == "__main__":
    # small shapes consistent with the module's forward
    B, S = 2, 8
    input_dim, d_model, nhead, num_layers, output_dim = 16, 32, 4, 2, 4

    key = jax.random.PRNGKey(0)
    kx, kp = jax.random.split(key)
    x = jax.random.normal(kx, (B, S, input_dim), jnp.float32)
    params = init_params(kp, input_dim, d_model, nhead, num_layers, output_dim, max_seq=64)

    # TODO(synk): dropout (p=0.1) is omitted — forward implemented in eval/inference mode.
    out = transformer_forward(x, params, nhead)
    out = jax.block_until_ready(out)
    assert out.shape == (B, output_dim)
    assert bool(jnp.all(jnp.isfinite(out)))

    ref = transformer_forward_ref(x, params, nhead)
    np.testing.assert_allclose(np.asarray(out), np.asarray(ref), rtol=1e-2, atol=1e-2)
    print("KERNEL_OK")
</pallas_src>

<mosaic_0001>
module attributes {stable_mosaic.version = 11 : i64} {
  func.func @fused_forward_kernel(%arg0: i32, %arg1: memref<2x8x16xf32, #tpu.memory_space<vmem>>, %arg2: memref<16x32xf32, #tpu.memory_space<vmem>>, %arg3: memref<1x32xf32, #tpu.memory_space<vmem>>, %arg4: memref<8x32xf32, #tpu.memory_space<vmem>>, %arg5: memref<1x32x96xf32, #tpu.memory_space<vmem>>, %arg6: memref<1x1x96xf32, #tpu.memory_space<vmem>>, %arg7: memref<1x32x32xf32, #tpu.memory_space<vmem>>, %arg8: memref<1x1x32xf32, #tpu.memory_space<vmem>>, %arg9: memref<1x1x32xf32, #tpu.memory_space<vmem>>, %arg10: memref<1x1x32xf32, #tpu.memory_space<vmem>>, %arg11: memref<1x32x128xf32, #tpu.memory_space<vmem>>, %arg12: memref<1x1x128xf32, #tpu.memory_space<vmem>>, %arg13: memref<1x128x32xf32, #tpu.memory_space<vmem>>, %arg14: memref<1x1x32xf32, #tpu.memory_space<vmem>>, %arg15: memref<1x1x32xf32, #tpu.memory_space<vmem>>, %arg16: memref<1x1x32xf32, #tpu.memory_space<vmem>>, %arg17: memref<32x128xf32, #tpu.memory_space<vmem>>, %arg18: memref<1x128xf32, #tpu.memory_space<vmem>>, %arg19: memref<2x128xf32, #tpu.memory_space<vmem>>, %arg20: memref<2x8x32xf32, #tpu.memory_space<vmem>>) attributes {dimension_semantics = [#tpu.dimension_semantics<arbitrary>], iteration_bounds = array<i64: 2>, scalar_prefetch = 0 : i64, scratch_operands = 1 : i64, tpu.core_type = #tpu.core_type<tc>, window_params = [{pipeline_mode = #tpu.pipeline_mode<synchronous>, transform_indices = @transform_0, window_bounds = array<i64: 2, 8, 16>}, {pipeline_mode = #tpu.pipeline_mode<synchronous>, transform_indices = @transform_1, window_bounds = array<i64: 16, 32>}, {pipeline_mode = #tpu.pipeline_mode<synchronous>, transform_indices = @transform_2, window_bounds = array<i64: 1, 32>}, {pipeline_mode = #tpu.pipeline_mode<synchronous>, transform_indices = @transform_3, window_bounds = array<i64: 8, 32>}, {transform_indices = @transform_4, window_bounds = array<i64: 1, 32, 96>}, {transform_indices = @transform_5, window_bounds = array<i64: 1, 1, 96>}, {transform_indices = @transform_6, window_bounds = array<i64: 1, 32, 32>}, {transform_indices = @transform_7, window_bounds = array<i64: 1, 1, 32>}, {transform_indices = @transform_8, window_bounds = array<i64: 1, 1, 32>}, {transform_indices = @transform_9, window_bounds = array<i64: 1, 1, 32>}, {transform_indices = @transform_10, window_bounds = array<i64: 1, 32, 128>}, {transform_indices = @transform_11, window_bounds = array<i64: 1, 1, 128>}, {transform_indices = @transform_12, window_bounds = array<i64: 1, 128, 32>}, {transform_indices = @transform_13, window_bounds = array<i64: 1, 1, 32>}, {transform_indices = @transform_14, window_bounds = array<i64: 1, 1, 32>}, {transform_indices = @transform_15, window_bounds = array<i64: 1, 1, 32>}, {pipeline_mode = #tpu.pipeline_mode<synchronous>, transform_indices = @transform_16, window_bounds = array<i64: 32, 128>}, {pipeline_mode = #tpu.pipeline_mode<synchronous>, transform_indices = @transform_17, window_bounds = array<i64: 1, 128>}, {pipeline_mode = #tpu.pipeline_mode<synchronous>, transform_indices = @transform_18, window_bounds = array<i64: 2, 128>}]} {
    %c0_i32 = arith.constant 0 : i32
    %0 = arith.cmpi eq, %arg0, %c0_i32 : i32
    %1 = arith.extui %0 : i1 to i32
    %c0_i32_0 = arith.constant 0 : i32
    %2 = arith.cmpi ne, %1, %c0_i32_0 : i32
    scf.if %2 {
      %c0_81 = arith.constant 0 : index
      %c0_82 = arith.constant 0 : index
      %c0_83 = arith.constant 0 : index
      %179 = vector.load %arg1[%c0_81, %c0_82, %c0_83] : memref<2x8x16xf32, #tpu.memory_space<vmem>>, vector<2x8x16xf32>
      %180 = vector.shape_cast %179 : vector<2x8x16xf32> to vector<16x16xf32>
      %c0_84 = arith.constant 0 : index
      %c0_85 = arith.constant 0 : index
      %181 = vector.load %arg2[%c0_84, %c0_85] : memref<16x32xf32, #tpu.memory_space<vmem>>, vector<16x32xf32>
      %cst_86 = arith.constant dense<0.000000e+00> : vector<16x32xf32>
      %182 = tpu.matmul %180, %181, %cst_86 {dimension_numbers = #tpu.dot_dimension_numbers<[1], [0], [0], [1], [0, 0, 1, 1], [], []>} : vector<16x16xf32>, vector<16x32xf32>, vector<16x32xf32> -> vector<16x32xf32>
      %c0_87 = arith.constant 0 : index
      %c0_88 = arith.constant 0 : index
      %183 = vector.load %arg3[%c0_87, %c0_88] : memref<1x32xf32, #tpu.memory_space<vmem>>, vector<1x32xf32>
      %184 = vector.broadcast %183 : vector<1x32xf32> to vector<16x32xf32>
      %185 = arith.addf %182, %184 : vector<16x32xf32>
      %186 = vector.shape_cast %185 : vector<16x32xf32> to vector<2x8x32xf32>
      %c0_89 = arith.constant 0 : index
      %c0_90 = arith.constant 0 : index
      %187 = vector.load %arg4[%c0_89, %c0_90] : memref<8x32xf32, #tpu.memory_space<vmem>>, vector<8x32xf32>
      %188 = vector.shape_cast %187 : vector<8x32xf32> to vector<1x8x32xf32>
      %189 = vector.broadcast %188 : vector<1x8x32xf32> to vector<2x8x32xf32>
      %190 = arith.addf %186, %189 : vector<2x8x32xf32>
      %c0_91 = arith.constant 0 : index
      %c0_92 = arith.constant 0 : index
      %c0_93 = arith.constant 0 : index
      %191 = vector.load %arg20[%c0_91, %c0_92, %c0_93] : memref<2x8x32xf32, #tpu.memory_space<vmem>>, vector<2x8x32xf32>
      tpu.vector_store %arg20[%c0_91, %c0_92, %c0_93], %190 {strides = array<i32>} : memref<2x8x32xf32, #tpu.memory_space<vmem>>, vector<2x8x32xf32>,
    } else {
    }
    %c0 = arith.constant 0 : index
    %c0_1 = arith.constant 0 : index
    %c0_2 = arith.constant 0 : index
    %3 = vector.load %arg20[%c0, %c0_1, %c0_2] : memref<2x8x32xf32, #tpu.memory_space<vmem>>, vector<2x8x32xf32>
    %4 = vector.shape_cast %3 : vector<2x8x32xf32> to vector<16x32xf32>
    %c0_3 = arith.constant 0 : index
    %c0_4 = arith.constant 0 : index
    %c0_5 = arith.constant 0 : index
    %5 = vector.load %arg5[%c0_3, %c0_4, %c0_5] : memref<1x32x96xf32, #tpu.memory_space<vmem>>, vector<1x32x96xf32>
    %6 = vector.shape_cast %5 : vector<1x32x96xf32> to vector<32x96xf32>
    %cst = arith.constant dense<0.000000e+00> : vector<16x96xf32>
    %7 = tpu.matmul %4, %6, %cst {dimension_numbers = #tpu.dot_dimension_numbers<[1], [0], [0], [1], [0, 0, 1, 1], [], []>} : vector<16x32xf32>, vector<32x96xf32>, vector<16x96xf32> -> vector<16x96xf32>
    %c0_6 = arith.constant 0 : index
    %c0_7 = arith.constant 0 : index
    %c0_8 = arith.constant 0 : index
    %8 = vector.load %arg6[%c0_6, %c0_7, %c0_8] : memref<1x1x96xf32, #tpu.memory_space<vmem>>, vector<1x1x96xf32>
    %9 = vector.shape_cast %8 : vector<1x1x96xf32> to vector<1x96xf32>
    %10 = vector.broadcast %9 : vector<1x96xf32> to vector<16x96xf32>
    %11 = arith.addf %7, %10 : vector<16x96xf32>
    %12 = vector.shape_cast %11 : vector<16x96xf32> to vector<2x8x96xf32>
    %c0_9 = arith.constant 0 : index
    %c0_10 = arith.constant 0 : index
    %c0_11 = arith.constant 0 : index
    %13 = vector.load %arg7[%c0_9, %c0_10, %c0_11] : memref<1x32x32xf32, #tpu.memory_space<vmem>>, vector<1x32x32xf32>
    %14 = vector.shape_cast %13 : vector<1x32x32xf32> to vector<32x32xf32>
    %cst_12 = arith.constant 0.000000e+00 : f32
    %15 = vector.broadcast %cst_12 : f32 to vector<16x32xf32>
    %16 = vector.extract_strided_slice %12 {offsets = [0, 0, 0], sizes = [2, 8, 8], strides = [1, 1, 1]} : vector<2x8x96xf32> to vector<2x8x8xf32>
    %17 = vector.extract_strided_slice %12 {offsets = [0, 0, 32], sizes = [2, 8, 8], strides = [1, 1, 1]} : vector<2x8x96xf32> to vector<2x8x8xf32>
    %18 = vector.extract_strided_slice %12 {offsets = [0, 0, 64], sizes = [2, 8, 8], strides = [1, 1, 1]} : vector<2x8x96xf32> to vector<2x8x8xf32>
    "tpu.trace_start"() <{level = 10 : i32, message = "bqd,bkd->bqk"}> : () -> ()
    %cst_13 = arith.constant dense<0.000000e+00> : vector<2x8x8xf32>
    %19 = tpu.matmul %16, %17, %cst_13 {dimension_numbers = #tpu.dot_dimension_numbers<[2], [2], [1], [1], [0, 0, 0, 1, 1, 1], [0], [0]>} : vector<2x8x8xf32>, vector<2x8x8xf32>, vector<2x8x8xf32> -> vector<2x8x8xf32>
    "tpu.trace_stop"() : () -> ()
    %cst_14 = arith.constant 0.353553385 : f32
    %20 = vector.broadcast %cst_14 : f32 to vector<2x8x8xf32>
    %21 = arith.mulf %19, %20 : vector<2x8x8xf32>
    %cst_15 = arith.constant dense<0xFF800000> : vector<2x8xf32>
    %22 = vector.multi_reduction <maximumf>, %21, %cst_15 [2] : vector<2x8x8xf32> to vector<2x8xf32>
    %23 = vector.shape_cast %22 : vector<2x8xf32> to vector<2x8x1xf32>
    %24 = vector.broadcast %23 : vector<2x8x1xf32> to vector<2x8x8xf32>
    %25 = arith.subf %21, %24 : vector<2x8x8xf32>
    %26 = math.exp %25 : vector<2x8x8xf32>
    %cst_16 = arith.constant dense<0.000000e+00> : vector<2x8xf32>
    %27 = vector.multi_reduction <add>, %26, %cst_16 [2] : vector<2x8x8xf32> to vector<2x8xf32>
    %28 = vector.shape_cast %27 : vector<2x8xf32> to vector<2x8x1xf32>
    %29 = tpu.reciprocal %28 {approx = true} : vector<2x8x1xf32> -> vector<2x8x1xf32>
    %30 = vector.broadcast %29 : vector<2x8x1xf32> to vector<2x8x8xf32>
    %31 = arith.mulf %26, %30 : vector<2x8x8xf32>
    "tpu.trace_start"() <{level = 10 : i32, message = "bqk,bkd->bqd"}> : () -> ()
    %cst_17 = arith.constant dense<0.000000e+00> : vector<2x8x8xf32>
    %32 = tpu.matmul %31, %18, %cst_17 {dimension_numbers = #tpu.dot_dimension_numbers<[2], [1], [1], [2], [0, 0, 0, 1, 1, 2], [0], [0]>} : vector<2x8x8xf32>, vector<2x8x8xf32>, vector<2x8x8xf32> -> vector<2x8x8xf32>
    "tpu.trace_stop"() : () -> ()
    %33 = vector.shape_cast %32 : vector<2x8x8xf32> to vector<16x8xf32>
    %34 = vector.extract_strided_slice %14 {offsets = [0, 0], sizes = [8, 32], strides = [1, 1]} : vector<32x32xf32> to vector<8x32xf32>
    %cst_18 = arith.constant dense<0.000000e+00> : vector<16x32xf32>
    %35 = tpu.matmul %33, %34, %cst_18 {dimension_numbers = #tpu.dot_dimension_numbers<[1], [0], [0], [1], [0, 0, 1, 1], [], []>} : vector<16x8xf32>, vector<8x32xf32>, vector<16x32xf32> -> vector<16x32xf32>
    %36 = arith.addf %15, %35 : vector<16x32xf32>
    %37 = vector.extract_strided_slice %12 {offsets = [0, 0, 8], sizes = [2, 8, 8], strides = [1, 1, 1]} : vector<2x8x96xf32> to vector<2x8x8xf32>
    %38 = vector.extract_strided_slice %12 {offsets = [0, 0, 40], sizes = [2, 8, 8], strides = [1, 1, 1]} : vector<2x8x96xf32> to vector<2x8x8xf32>
    %39 = vector.extract_strided_slice %12 {offsets = [0, 0, 72], sizes = [2, 8, 8], strides = [1, 1, 1]} : vector<2x8x96xf32> to vector<2x8x8xf32>
    "tpu.trace_start"() <{level = 10 : i32, message = "bqd,bkd->bqk"}> : () -> ()
    %cst_19 = arith.constant dense<0.000000e+00> : vector<2x8x8xf32>
    %40 = tpu.matmul %37, %38, %cst_19 {dimension_numbers = #tpu.dot_dimension_numbers<[2], [2], [1], [1], [0, 0, 0, 1, 1, 1], [0], [0]>} : vector<2x8x8xf32>, vector<2x8x8xf32>, vector<2x8x8xf32> -> vector<2x8x8xf32>
    "tpu.trace_stop"() : () -> ()
    %cst_20 = arith.constant 0.353553385 : f32
    %41 = vector.broadcast %cst_20 : f32 to vector<2x8x8xf32>
    %42 = arith.mulf %40, %41 : vector<2x8x8xf32>
    %cst_21 = arith.constant dense<0xFF800000> : vector<2x8xf32>
    %43 = vector.multi_reduction <maximumf>, %42, %cst_21 [2] : vector<2x8x8xf32> to vector<2x8xf32>
    %44 = vector.shape_cast %43 : vector<2x8xf32> to vector<2x8x1xf32>
    %45 = vector.broadcast %44 : vector<2x8x1xf32> to vector<2x8x8xf32>
    %46 = arith.subf %42, %45 : vector<2x8x8xf32>
    %47 = math.exp %46 : vector<2x8x8xf32>
    %cst_22 = arith.constant dense<0.000000e+00> : vector<2x8xf32>
    %48 = vector.multi_reduction <add>, %47, %cst_22 [2] : vector<2x8x8xf32> to vector<2x8xf32>
    %49 = vector.shape_cast %48 : vector<2x8xf32> to vector<2x8x1xf32>
    %50 = tpu.reciprocal %49 {approx = true} : vector<2x8x1xf32> -> vector<2x8x1xf32>
    %51 = vector.broadcast %50 : vector<2x8x1xf32> to vector<2x8x8xf32>
    %52 = arith.mulf %47, %51 : vector<2x8x8xf32>
    "tpu.trace_start"() <{level = 10 : i32, message = "bqk,bkd->bqd"}> : () -> ()
    %cst_23 = arith.constant dense<0.000000e+00> : vector<2x8x8xf32>
    %53 = tpu.matmul %52, %39, %cst_23 {dimension_numbers = #tpu.dot_dimension_numbers<[2], [1], [1], [2], [0, 0, 0, 1, 1, 2], [0], [0]>} : vector<2x8x8xf32>, vector<2x8x8xf32>, vector<2x8x8xf32> -> vector<2x8x8xf32>
    "tpu.trace_stop"() : () -> ()
    %54 = vector.shape_cast %53 : vector<2x8x8xf32> to vector<16x8xf32>
    %55 = vector.extract_strided_slice %14 {offsets = [8, 0], sizes = [8, 32], strides = [1, 1]} : vector<32x32xf32> to vector<8x32xf32>
    %cst_24 = arith.constant dense<0.000000e+00> : vector<16x32xf32>
    %56 = tpu.matmul %54, %55, %cst_24 {dimension_numbers = #tpu.dot_dimension_numbers<[1], [0], [0], [1], [0, 0, 1, 1], [], []>} : vector<16x8xf32>, vector<8x32xf32>, vector<16x32xf32> -> vector<16x32xf32>
    %57 = arith.addf %36, %56 : vector<16x32xf32>
    %58 = vector.extract_strided_slice %12 {offsets = [0, 0, 16], sizes = [2, 8, 8], strides = [1, 1, 1]} : vector<2x8x96xf32> to vector<2x8x8xf32>
    %59 = vector.extract_strided_slice %12 {offsets = [0, 0, 48], sizes = [2, 8, 8], strides = [1, 1, 1]} : vector<2x8x96xf32> to vector<2x8x8xf32>
    %60 = vector.extract_strided_slice %12 {offsets = [0, 0, 80], sizes = [2, 8, 8], strides = [1, 1, 1]} : vector<2x8x96xf32> to vector<2x8x8xf32>
    "tpu.trace_start"() <{level = 10 : i32, message = "bqd,bkd->bqk"}> : () -> ()
    %cst_25 = arith.constant dense<0.000000e+00> : vector<2x8x8xf32>
    %61 = tpu.matmul %58, %59, %cst_25 {dimension_numbers = #tpu.dot_dimension_numbers<[2], [2], [1], [1], [0, 0, 0, 1, 1, 1], [0], [0]>} : vector<2x8x8xf32>, vector<2x8x8xf32>, vector<2x8x8xf32> -> vector<2x8x8xf32>
    "tpu.trace_stop"() : () -> ()
    %cst_26 = arith.constant 0.353553385 : f32
    %62 = vector.broadcast %cst_26 : f32 to vector<2x8x8xf32>
    %63 = arith.mulf %61, %62 : vector<2x8x8xf32>
    %cst_27 = arith.constant dense<0xFF800000> : vector<2x8xf32>
    %64 = vector.multi_reduction <maximumf>, %63, %cst_27 [2] : vector<2x8x8xf32> to vector<2x8xf32>
    %65 = vector.shape_cast %64 : vector<2x8xf32> to vector<2x8x1xf32>
    %66 = vector.broadcast %65 : vector<2x8x1xf32> to vector<2x8x8xf32>
    %67 = arith.subf %63, %66 : vector<2x8x8xf32>
    %68 = math.exp %67 : vector<2x8x8xf32>
    %cst_28 = arith.constant dense<0.000000e+00> : vector<2x8xf32>
    %69 = vector.multi_reduction <add>, %68, %cst_28 [2] : vector<2x8x8xf32> to vector<2x8xf32>
    %70 = vector.shape_cast %69 : vector<2x8xf32> to vector<2x8x1xf32>
    %71 = tpu.reciprocal %70 {approx = true} : vector<2x8x1xf32> -> vector<2x8x1xf32>
    %72 = vector.broadcast %71 : vector<2x8x1xf32> to vector<2x8x8xf32>
    %73 = arith.mulf %68, %72 : vector<2x8x8xf32>
    "tpu.trace_start"() <{level = 10 : i32, message = "bqk,bkd->bqd"}> : () -> ()
    %cst_29 = arith.constant dense<0.000000e+00> : vector<2x8x8xf32>
    %74 = tpu.matmul %73, %60, %cst_29 {dimension_numbers = #tpu.dot_dimension_numbers<[2], [1], [1], [2], [0, 0, 0, 1, 1, 2], [0], [0]>} : vector<2x8x8xf32>, vector<2x8x8xf32>, vector<2x8x8xf32> -> vector<2x8x8xf32>
    "tpu.trace_stop"() : () -> ()
    %75 = vector.shape_cast %74 : vector<2x8x8xf32> to vector<16x8xf32>
    %76 = vector.extract_strided_slice %14 {offsets = [16, 0], sizes = [8, 32], strides = [1, 1]} : vector<32x32xf32> to vector<8x32xf32>
    %cst_30 = arith.constant dense<0.000000e+00> : vector<16x32xf32>
    %77 = tpu.matmul %75, %76, %cst_30 {dimension_numbers = #tpu.dot_dimension_numbers<[1], [0], [0], [1], [0, 0, 1, 1], [], []>} : vector<16x8xf32>, vector<8x32xf32>, vector<16x32xf32> -> vector<16x32xf32>
    %78 = arith.addf %57, %77 : vector<16x32xf32>
    %79 = vector.extract_strided_slice %12 {offsets = [0, 0, 24], sizes = [2, 8, 8], strides = [1, 1, 1]} : vector<2x8x96xf32> to vector<2x8x8xf32>
    %80 = vector.extract_strided_slice %12 {offsets = [0, 0, 56], sizes = [2, 8, 8], strides = [1, 1, 1]} : vector<2x8x96xf32> to vector<2x8x8xf32>
    %81 = vector.extract_strided_slice %12 {offsets = [0, 0, 88], sizes = [2, 8, 8], strides = [1, 1, 1]} : vector<2x8x96xf32> to vector<2x8x8xf32>
    "tpu.trace_start"() <{level = 10 : i32, message = "bqd,bkd->bqk"}> : () -> ()
    %cst_31 = arith.constant dense<0.000000e+00> : vector<2x8x8xf32>
    %82 = tpu.matmul %79, %80, %cst_31 {dimension_numbers = #tpu.dot_dimension_numbers<[2], [2], [1], [1], [0, 0, 0, 1, 1, 1], [0], [0]>} : vector<2x8x8xf32>, vector<2x8x8xf32>, vector<2x8x8xf32> -> vector<2x8x8xf32>
    "tpu.trace_stop"() : () -> ()
    %cst_32 = arith.constant 0.353553385 : f32
    %83 = vector.broadcast %cst_32 : f32 to vector<2x8x8xf32>
    %84 = arith.mulf %82, %83 : vector<2x8x8xf32>
    %cst_33 = arith.constant dense<0xFF800000> : vector<2x8xf32>
    %85 = vector.multi_reduction <maximumf>, %84, %cst_33 [2] : vector<2x8x8xf32> to vector<2x8xf32>
    %86 = vector.shape_cast %85 : vector<2x8xf32> to vector<2x8x1xf32>
    %87 = vector.broadcast %86 : vector<2x8x1xf32> to vector<2x8x8xf32>
    %88 = arith.subf %84, %87 : vector<2x8x8xf32>
    %89 = math.exp %88 : vector<2x8x8xf32>
    %cst_34 = arith.constant dense<0.000000e+00> : vector<2x8xf32>
    %90 = vector.multi_reduction <add>, %89, %cst_34 [2] : vector<2x8x8xf32> to vector<2x8xf32>
    %91 = vector.shape_cast %90 : vector<2x8xf32> to vector<2x8x1xf32>
    %92 = tpu.reciprocal %91 {approx = true} : vector<2x8x1xf32> -> vector<2x8x1xf32>
    %93 = vector.broadcast %92 : vector<2x8x1xf32> to vector<2x8x8xf32>
    %94 = arith.mulf %89, %93 : vector<2x8x8xf32>
    "tpu.trace_start"() <{level = 10 : i32, message = "bqk,bkd->bqd"}> : () -> ()
    %cst_35 = arith.constant dense<0.000000e+00> : vector<2x8x8xf32>
    %95 = tpu.matmul %94, %81, %cst_35 {dimension_numbers = #tpu.dot_dimension_numbers<[2], [1], [1], [2], [0, 0, 0, 1, 1, 2], [0], [0]>} : vector<2x8x8xf32>, vector<2x8x8xf32>, vector<2x8x8xf32> -> vector<2x8x8xf32>
    "tpu.trace_stop"() : () -> ()
    %96 = vector.shape_cast %95 : vector<2x8x8xf32> to vector<16x8xf32>
    %97 = vector.extract_strided_slice %14 {offsets = [24, 0], sizes = [8, 32], strides = [1, 1]} : vector<32x32xf32> to vector<8x32xf32>
    %cst_36 = arith.constant dense<0.000000e+00> : vector<16x32xf32>
    %98 = tpu.matmul %96, %97, %cst_36 {dimension_numbers = #tpu.dot_dimension_numbers<[1], [0], [0], [1], [0, 0, 1, 1], [], []>} : vector<16x8xf32>, vector<8x32xf32>, vector<16x32xf32> -> vector<16x32xf32>
    %99 = arith.addf %78, %98 : vector<16x32xf32>
    %c0_37 = arith.constant 0 : index
    %c0_38 = arith.constant 0 : index
    %c0_39 = arith.constant 0 : index
    %100 = vector.load %arg8[%c0_37, %c0_38, %c0_39] : memref<1x1x32xf32, #tpu.memory_space<vmem>>, vector<1x1x32xf32>
    %101 = vector.shape_cast %100 : vector<1x1x32xf32> to vector<1x32xf32>
    %102 = vector.broadcast %101 : vector<1x32xf32> to vector<16x32xf32>
    %103 = arith.addf %99, %102 : vector<16x32xf32>
    %104 = arith.addf %4, %103 : vector<16x32xf32>
    %c0_40 = arith.constant 0 : index
    %c0_41 = arith.constant 0 : index
    %c0_42 = arith.constant 0 : index
    %105 = vector.load %arg9[%c0_40, %c0_41, %c0_42] : memref<1x1x32xf32, #tpu.memory_space<vmem>>, vector<1x1x32xf32>
    %106 = vector.shape_cast %105 : vector<1x1x32xf32> to vector<1x32xf32>
    %c0_43 = arith.constant 0 : index
    %c0_44 = arith.constant 0 : index
    %c0_45 = arith.constant 0 : index
    %107 = vector.load %arg10[%c0_43, %c0_44, %c0_45] : memref<1x1x32xf32, #tpu.memory_space<vmem>>, vector<1x1x32xf32>
    %108 = vector.shape_cast %107 : vector<1x1x32xf32> to vector<1x32xf32>
    %cst_46 = arith.constant dense<0.000000e+00> : vector<16xf32>
    %109 = vector.multi_reduction <add>, %104, %cst_46 [1] : vector<16x32xf32> to vector<16xf32>
    %110 = vector.shape_cast %109 : vector<16xf32> to vector<16x1xf32>
    %cst_47 = arith.constant 3.200000e+01 : f32
    %111 = vector.broadcast %cst_47 : f32 to vector<16x1xf32>
    %112 = arith.divf %110, %111 : vector<16x1xf32>
    %113 = vector.broadcast %112 : vector<16x1xf32> to vector<16x32xf32>
    %114 = arith.subf %104, %113 : vector<16x32xf32>
    %115 = arith.mulf %114, %114 : vector<16x32xf32>
    %cst_48 = arith.constant dense<0.000000e+00> : vector<16xf32>
    %116 = vector.multi_reduction <add>, %115, %cst_48 [1] : vector<16x32xf32> to vector<16xf32>
    %117 = vector.shape_cast %116 : vector<16xf32> to vector<16x1xf32>
    %cst_49 = arith.constant 3.200000e+01 : f32
    %118 = vector.broadcast %cst_49 : f32 to vector<16x1xf32>
    %119 = arith.divf %117, %118 : vector<16x1xf32>
    %120 = vector.broadcast %112 : vector<16x1xf32> to vector<16x32xf32>
    %121 = arith.subf %104, %120 : vector<16x32xf32>
    %cst_50 = arith.constant 9.99999974E-6 : f32
    %122 = vector.broadcast %cst_50 : f32 to vector<16x1xf32>
    %123 = arith.addf %119, %122 : vector<16x1xf32>
    %124 = math.rsqrt %123 : vector<16x1xf32>
    %125 = vector.broadcast %124 : vector<16x1xf32> to vector<16x32xf32>
    %126 = arith.mulf %121, %125 : vector<16x32xf32>
    %127 = vector.broadcast %106 : vector<1x32xf32> to vector<16x32xf32>
    %128 = arith.mulf %126, %127 : vector<16x32xf32>
    %129 = vector.broadcast %108 : vector<1x32xf32> to vector<16x32xf32>
    %130 = arith.addf %128, %129 : vector<16x32xf32>
    %c0_51 = arith.constant 0 : index
    %c0_52 = arith.constant 0 : index
    %c0_53 = arith.constant 0 : index
    %131 = vector.load %arg11[%c0_51, %c0_52, %c0_53] : memref<1x32x128xf32, #tpu.memory_space<vmem>>, vector<1x32x128xf32>
    %132 = vector.shape_cast %131 : vector<1x32x128xf32> to vector<32x128xf32>
    %cst_54 = arith.constant dense<0.000000e+00> : vector<16x128xf32>
    %133 = tpu.matmul %130, %132, %cst_54 {dimension_numbers = #tpu.dot_dimension_numbers<[1], [0], [0], [1], [0, 0, 1, 1], [], []>} : vector<16x32xf32>, vector<32x128xf32>, vector<16x128xf32> -> vector<16x128xf32>
    %c0_55 = arith.constant 0 : index
    %c0_56 = arith.constant 0 : index
    %c0_57 = arith.constant 0 : index
    %134 = vector.load %arg12[%c0_55, %c0_56, %c0_57] : memref<1x1x128xf32, #tpu.memory_space<vmem>>, vector<1x1x128xf32>
    %135 = vector.shape_cast %134 : vector<1x1x128xf32> to vector<1x128xf32>
    %136 = vector.broadcast %135 : vector<1x128xf32> to vector<16x128xf32>
    %137 = arith.addf %133, %136 : vector<16x128xf32>
    %cst_58 = arith.constant 0.000000e+00 : f32
    %138 = vector.broadcast %cst_58 : f32 to vector<16x128xf32>
    %139 = arith.maximumf %137, %138 : vector<16x128xf32>
    %c0_59 = arith.constant 0 : index
    %c0_60 = arith.constant 0 : index
    %c0_61 = arith.constant 0 : index
    %140 = vector.load %arg13[%c0_59, %c0_60, %c0_61] : memref<1x128x32xf32, #tpu.memory_space<vmem>>, vector<1x128x32xf32>
    %141 = vector.shape_cast %140 : vector<1x128x32xf32> to vector<128x32xf32>
    %cst_62 = arith.constant dense<0.000000e+00> : vector<16x32xf32>
    %142 = tpu.matmul %139, %141, %cst_62 {dimension_numbers = #tpu.dot_dimension_numbers<[1], [0], [0], [1], [0, 0, 1, 1], [], []>} : vector<16x128xf32>, vector<128x32xf32>, vector<16x32xf32> -> vector<16x32xf32>
    %c0_63 = arith.constant 0 : index
    %c0_64 = arith.constant 0 : index
    %c0_65 = arith.constant 0 : index
    %143 = vector.load %arg14[%c0_63, %c0_64, %c0_65] : memref<1x1x32xf32, #tpu.memory_space<vmem>>, vector<1x1x32xf32>
    %144 = vector.shape_cast %143 : vector<1x1x32xf32> to vector<1x32xf32>
    %145 = vector.broadcast %144 : vector<1x32xf32> to vector<16x32xf32>
    %146 = arith.addf %142, %145 : vector<16x32xf32>
    %147 = arith.addf %130, %146 : vector<16x32xf32>
    %c0_66 = arith.constant 0 : index
    %c0_67 = arith.constant 0 : index
    %c0_68 = arith.constant 0 : index
    %148 = vector.load %arg15[%c0_66, %c0_67, %c0_68] : memref<1x1x32xf32, #tpu.memory_space<vmem>>, vector<1x1x32xf32>
    %149 = vector.shape_cast %148 : vector<1x1x32xf32> to vector<1x32xf32>
    %c0_69 = arith.constant 0 : index
    %c0_70 = arith.constant 0 : index
    %c0_71 = arith.constant 0 : index
    %150 = vector.load %arg16[%c0_69, %c0_70, %c0_71] : memref<1x1x32xf32, #tpu.memory_space<vmem>>, vector<1x1x32xf32>
    %151 = vector.shape_cast %150 : vector<1x1x32xf32> to vector<1x32xf32>
    %cst_72 = arith.constant dense<0.000000e+00> : vector<16xf32>
    %152 = vector.multi_reduction <add>, %147, %cst_72 [1] : vector<16x32xf32> to vector<16xf32>
    %153 = vector.shape_cast %152 : vector<16xf32> to vector<16x1xf32>
    %cst_73 = arith.constant 3.200000e+01 : f32
    %154 = vector.broadcast %cst_73 : f32 to vector<16x1xf32>
    %155 = arith.divf %153, %154 : vector<16x1xf32>
    %156 = vector.broadcast %155 : vector<16x1xf32> to vector<16x32xf32>
    %157 = arith.subf %147, %156 : vector<16x32xf32>
    %158 = arith.mulf %157, %157 : vector<16x32xf32>
    %cst_74 = arith.constant dense<0.000000e+00> : vector<16xf32>
    %159 = vector.multi_reduction <add>, %158, %cst_74 [1] : vector<16x32xf32> to vector<16xf32>
    %160 = vector.shape_cast %159 : vector<16xf32> to vector<16x1xf32>
    %cst_75 = arith.constant 3.200000e+01 : f32
    %161 = vector.broadcast %cst_75 : f32 to vector<16x1xf32>
    %162 = arith.divf %160, %161 : vector<16x1xf32>
    %163 = vector.broadcast %155 : vector<16x1xf32> to vector<16x32xf32>
    %164 = arith.subf %147, %163 : vector<16x32xf32>
    %cst_76 = arith.constant 9.99999974E-6 : f32
    %165 = vector.broadcast %cst_76 : f32 to vector<16x1xf32>
    %166 = arith.addf %162, %165 : vector<16x1xf32>
    %167 = math.rsqrt %166 : vector<16x1xf32>
    %168 = vector.broadcast %167 : vector<16x1xf32> to vector<16x32xf32>
    %169 = arith.mulf %164, %168 : vector<16x32xf32>
    %170 = vector.broadcast %149 : vector<1x32xf32> to vector<16x32xf32>
    %171 = arith.mulf %169, %170 : vector<16x32xf32>
    %172 = vector.broadcast %151 : vector<1x32xf32> to vector<16x32xf32>
    %173 = arith.addf %171, %172 : vector<16x32xf32>
    %174 = vector.shape_cast %173 : vector<16x32xf32> to vector<2x8x32xf32>
    %c0_77 = arith.constant 0 : index
    %c0_78 = arith.constant 0 : index
    %c0_79 = arith.constant 0 : index
    %175 = vector.load %arg20[%c0_77, %c0_78, %c0_79] : memref<2x8x32xf32, #tpu.memory_space<vmem>>, vector<2x8x32xf32>
    tpu.vector_store %arg20[%c0_77, %c0_78, %c0_79], %174 {strides = array<i32>} : memref<2x8x32xf32, #tpu.memory_space<vmem>>, vector<2x8x32xf32>,
    %c1_i32 = arith.constant 1 : i32
    %176 = arith.cmpi eq, %arg0, %c1_i32 : i32
    %177 = arith.extui %176 : i1 to i32
    %c0_i32_80 = arith.constant 0 : i32
    %178 = arith.cmpi ne, %177, %c0_i32_80 : i32
    scf.if %178 {
      %179 = vector.shape_cast %173 : vector<16x32xf32> to vector<2x8x32xf32>
      %180 = vector.extract_strided_slice %179 {offsets = [0, 7, 0], sizes = [2, 1, 32], strides = [1, 1, 1]} : vector<2x8x32xf32> to vector<2x1x32xf32>
      %181 = vector.shape_cast %180 : vector<2x1x32xf32> to vector<2x32xf32>
      %c0_81 = arith.constant 0 : index
      %c0_82 = arith.constant 0 : index
      %182 = vector.load %arg17[%c0_81, %c0_82] : memref<32x128xf32, #tpu.memory_space<vmem>>, vector<32x128xf32>
      %cst_83 = arith.constant dense<0.000000e+00> : vector<2x128xf32>
      %183 = tpu.matmul %181, %182, %cst_83 {dimension_numbers = #tpu.dot_dimension_numbers<[1], [0], [0], [1], [0, 0, 1, 1], [], []>} : vector<2x32xf32>, vector<32x128xf32>, vector<2x128xf32> -> vector<2x128xf32>
      %c0_84 = arith.constant 0 : index
      %c0_85 = arith.constant 0 : index
      %184 = vector.load %arg18[%c0_84, %c0_85] : memref<1x128xf32, #tpu.memory_space<vmem>>, vector<1x128xf32>
      %185 = vector.broadcast %184 : vector<1x128xf32> to vector<2x128xf32>
      %186 = arith.addf %183, %185 : vector<2x128xf32>
      %c0_86 = arith.constant 0 : index
      %c0_87 = arith.constant 0 : index
      %187 = vector.load %arg19[%c0_86, %c0_87] : memref<2x128xf32, #tpu.memory_space<vmem>>, vector<2x128xf32>
      tpu.vector_store %arg19[%c0_86, %c0_87], %186 {strides = array<i32>} : memref<2x128xf32, #tpu.memory_space<vmem>>, vector<2x128xf32>,
    } else {
    }
    return
  }
  func.func @transform_0(%arg0: i32) -> (i32, i32, i32) {
    %c0_i32 = arith.constant 0 : i32
    %c0_i32_0 = arith.constant 0 : i32
    %c0_i32_1 = arith.constant 0 : i32
    %c0_i32_2 = arith.constant 0 : i32
    return %c0_i32, %c0_i32_0, %c0_i32_1 : i32, i32, i32
  }
  func.func @transform_1(%arg0: i32) -> (i32, i32) {
    %c0_i32 = arith.constant 0 : i32
    %c0_i32_0 = arith.constant 0 : i32
    %c0_i32_1 = arith.constant 0 : i32
    return %c0_i32, %c0_i32_0 : i32, i32
  }
  func.func @transform_2(%arg0: i32) -> (i32, i32) {
    %c0_i32 = arith.constant 0 : i32
    %c0_i32_0 = arith.constant 0 : i32
    %c0_i32_1 = arith.constant 0 : i32
    return %c0_i32, %c0_i32_0 : i32, i32
  }
  func.func @transform_3(%arg0: i32) -> (i32, i32) {
    %c0_i32 = arith.constant 0 : i32
    %c0_i32_0 = arith.constant 0 : i32
    %c0_i32_1 = arith.constant 0 : i32
    return %c0_i32, %c0_i32_0 : i32, i32
  }
  func.func @transform_4(%arg0: i32) -> (i32, i32, i32) {
    %c0_i32 = arith.constant 0 : i32
    %c0_i32_0 = arith.constant 0 : i32
    %c0_i32_1 = arith.constant 0 : i32
    return %arg0, %c0_i32, %c0_i32_0 : i32, i32, i32
  }
  func.func @transform_5(%arg0: i32) -> (i32, i32, i32) {
    %c0_i32 = arith.constant 0 : i32
    %c0_i32_0 = arith.constant 0 : i32
    %c0_i32_1 = arith.constant 0 : i32
    return %arg0, %c0_i32, %c0_i32_0 : i32, i32, i32
  }
  func.func @transform_6(%arg0: i32) -> (i32, i32, i32) {
    %c0_i32 = arith.constant 0 : i32
    %c0_i32_0 = arith.constant 0 : i32
    %c0_i32_1 = arith.constant 0 : i32
    return %arg0, %c0_i32, %c0_i32_0 : i32, i32, i32
  }
  func.func @transform_7(%arg0: i32) -> (i32, i32, i32) {
    %c0_i32 = arith.constant 0 : i32
    %c0_i32_0 = arith.constant 0 : i32
    %c0_i32_1 = arith.constant 0 : i32
    return %arg0, %c0_i32, %c0_i32_0 : i32, i32, i32
  }
  func.func @transform_8(%arg0: i32) -> (i32, i32, i32) {
    %c0_i32 = arith.constant 0 : i32
    %c0_i32_0 = arith.constant 0 : i32
    %c0_i32_1 = arith.constant 0 : i32
    return %arg0, %c0_i32, %c0_i32_0 : i32, i32, i32
  }
  func.func @transform_9(%arg0: i32) -> (i32, i32, i32) {
    %c0_i32 = arith.constant 0 : i32
    %c0_i32_0 = arith.constant 0 : i32
    %c0_i32_1 = arith.constant 0 : i32
    return %arg0, %c0_i32, %c0_i32_0 : i32, i32, i32
  }
  func.func @transform_10(%arg0: i32) -> (i32, i32, i32) {
    %c0_i32 = arith.constant 0 : i32
    %c0_i32_0 = arith.constant 0 : i32
    %c0_i32_1 = arith.constant 0 : i32
    return %arg0, %c0_i32, %c0_i32_0 : i32, i32, i32
  }
  func.func @transform_11(%arg0: i32) -> (i32, i32, i32) {
    %c0_i32 = arith.constant 0 : i32
    %c0_i32_0 = arith.constant 0 : i32
    %c0_i32_1 = arith.constant 0 : i32
    return %arg0, %c0_i32, %c0_i32_0 : i32, i32, i32
  }
  func.func @transform_12(%arg0: i32) -> (i32, i32, i32) {
    %c0_i32 = arith.constant 0 : i32
    %c0_i32_0 = arith.constant 0 : i32
    %c0_i32_1 = arith.constant 0 : i32
    return %arg0, %c0_i32, %c0_i32_0 : i32, i32, i32
  }
  func.func @transform_13(%arg0: i32) -> (i32, i32, i32) {
    %c0_i32 = arith.constant 0 : i32
    %c0_i32_0 = arith.constant 0 : i32
    %c0_i32_1 = arith.constant 0 : i32
    return %arg0, %c0_i32, %c0_i32_0 : i32, i32, i32
  }
  func.func @transform_14(%arg0: i32) -> (i32, i32, i32) {
    %c0_i32 = arith.constant 0 : i32
    %c0_i32_0 = arith.constant 0 : i32
    %c0_i32_1 = arith.constant 0 : i32
    return %arg0, %c0_i32, %c0_i32_0 : i32, i32, i32
  }
  func.func @transform_15(%arg0: i32) -> (i32, i32, i32) {
    %c0_i32 = arith.constant 0 : i32
    %c0_i32_0 = arith.constant 0 : i32
    %c0_i32_1 = arith.constant 0 : i32
    return %arg0, %c0_i32, %c0_i32_0 : i32, i32, i32
  }
  func.func @transform_16(%arg0: i32) -> (i32, i32) {
    %c0_i32 = arith.constant 0 : i32
    %c0_i32_0 = arith.constant 0 : i32
    %c0_i32_1 = arith.constant 0 : i32
    return %c0_i32, %c0_i32_0 : i32, i32
  }
  func.func @transform_17(%arg0: i32) -> (i32, i32) {
    %c0_i32 = arith.constant 0 : i32
    %c0_i32_0 = arith.constant 0 : i32
    %c0_i32_1 = arith.constant 0 : i32
    return %c0_i32, %c0_i32_0 : i32, i32
  }
  func.func @transform_18(%arg0: i32) -> (i32, i32) {
    %c0_i32 = arith.constant 0 : i32
    %c0_i32_0 = arith.constant 0 : i32
    %c0_i32_1 = arith.constant 0 : i32
    return %c0_i32, %c0_i32_0 : i32, i32
  }
}

</mosaic_0001>

<bundles_post_ra>
// kernel: tpu_custom_call.1
= control target key start
LH: loop header
LB: loop body
LE: loop exit
PB: predicated region body
PF: predicated region fallthrough
CT: control target
= control target key end

     0   :  { %s4036_s0 = inlined_call_operand.vmem [shape: f32[2,8,16], index: 0, kind: input, shape index: {}]   ;;  %s4037_s1 = inlined_call_operand.vmem [shape: f32[16,32], index: 1, kind: input, shape index: {}]   ;;  %s4038_s2 = inlined_call_operand.vmem [shape: f32[1,32], index: 2, kind: input, shape index: {}]   ;;  %s4039_s3 = inlined_call_operand.vmem [shape: f32[8,32], index: 3, kind: input, shape index: {}]   ;;  %s4040_s4 = inlined_call_operand.vmem [shape: f32[2,32,96], index: 4, kind: input, shape index: {}]   ;;  %s4041_s5 = inlined_call_operand.vmem [shape: f32[2,1,96], index: 5, kind: input, shape index: {}]   ;;  %s4042_s6 = inlined_call_operand.vmem [shape: f32[2,32,32], index: 6, kind: input, shape index: {}]   ;;  %s4043_s7 = inlined_call_operand.vmem [shape: f32[2,1,32], index: 7, kind: input, shape index: {}]   ;;  %s4044_s8 = inlined_call_operand.vmem [shape: f32[2,1,32], index: 8, kind: input, shape index: {}]   ;;  %s4045_s9 = inlined_call_operand.vmem [shape: f32[2,1,32], index: 9, kind: input, shape index: {}]   ;;  %s4046_s10 = inlined_call_operand.vmem [shape: f32[2,32,128], index: 10, kind: input, shape index: {}]   ;;  %s4047_s11 = inlined_call_operand.vmem [shape: f32[2,1,128], index: 11, kind: input, shape index: {}]   ;;  %s4048_s12 = inlined_call_operand.vmem [shape: f32[2,128,32], index: 12, kind: input, shape index: {}]   ;;  %s4049_s13 = inlined_call_operand.vmem [shape: f32[2,1,32], index: 13, kind: input, shape index: {}]   ;;  %s4050_s14 = inlined_call_operand.vmem [shape: f32[2,1,32], index: 14, kind: input, shape index: {}]   ;;  %s4051_s15 = inlined_call_operand.vmem [shape: f32[2,1,32], index: 15, kind: input, shape index: {}]   ;;  %s4052_s16 = inlined_call_operand.vmem [shape: f32[32,128], index: 16, kind: input, shape index: {}]   ;;  %s4053_s17 = inlined_call_operand.vmem [shape: f32[1,128], index: 17, kind: input, shape index: {}]   ;;  %s4054_s18 = inlined_call_operand.hbm [shape: f32[2,128], index: 18, kind: output, shape index: {}]  }
   0x1   :  { %4060 = sst [smem:[#allocation8_spill]] %s4036_s0 }
   0x2   :  { %4061 = sst [smem:[#allocation9_spill]] %s4037_s1 }
   0x3   :  { %4062 = sst [smem:[#allocation10_spill]] %s4038_s2 }
   0x4   :  { %4063 = sst [smem:[#allocation11_spill]] %s4040_s4 }
   0x5   :  { %4064 = sst [smem:[#allocation12_spill]] %s4042_s6 }
   0x6   :  { %4065 = sst [smem:[#allocation13_spill]] %s4052_s16 }
   0x7   :  { %4066 = sst [smem:[#allocation14_spill]] %s4053_s17 }
   0x8   :  { %4067 = sst [smem:[#allocation15_spill]] %s4054_s18 }
   0x9   :  { %23 = vsyncpa [#allocation4], 0  ;;  %s3681_s27 = smov 0  }
   0xa LB: > { %4068 = sst [smem:[#allocation6_spill]] %s3568_s27  ;;  %s3687_s28 = sadd.s32 4294967295, %s3568_s27   ;;  %s3568_s27 = sphi %s3681_s27, %s29_s27  }
   0xb   : > { %p3138_p0 = scmp.ge.s32.totalorder %s3568_s27, 1  ;;  %p602_p1 = scmp.lt.s32.totalorder %s3568_s27, 3 }
   0xd   : > { %p603_p2 = pnand %p3138_p0, %p602_p1 }
   0xf   : > { %606 = sbr.rel (%p603_p2) target bundleno = 4630 (0x1216), region = 92 }
  0x14   : > { %p690_p3 = scmp.lt.s32.totalorder %s3687_s28, 1  ;;  %s4069_s4 = sld [smem:[#allocation11_spill]] }
  0x15   : > { %s4070_s6 = sld [smem:[#allocation12_spill]]  ;;  %p3147_p4 = scmp.ne.s32.totalorder %s3687_s28, 0 }
  0x16   : > { %s3693_s29 = scalar_select %p690_p3, %s3687_s28, 1 }
  0x17   : > { %s4072_s25 = sld [smem:[#allocation9_spill]] (!%p3147_p4) }
  0x18   : > { %s3202_s30 = sshll.u32 %s3693_s29, 5  ;;  %s730_s20 = scalar_lea.vmem %s4050_s14, %s3693_s29 }
  0x19   : > { %s733_s16 = scalar_lea.vmem %s4051_s15, %s3693_s29  ;;  %737 = sbr.rel (%p3147_p4) target bundleno = 237 (0xed), region = 96 }
  0x1a   : > { %s3703_s22 = scalar_lea.vmem %s4069_s4, %s3202_s30  ;;  %s3725_s4 = scalar_lea.vmem %s4046_s10, %s3202_s30 }
  0x1b   : > { %s3708_s24 = scalar_lea.vmem %s4070_s6, %s3202_s30  ;;  %s719_s6 = scalar_lea.vmem %s4047_s11, %s3693_s29 }
  0x1c   : > { %4071 = sst [smem:[#allocation7_spill]] %s3708_s24  ;;  %s3205_s24 = sshll.u32 %s3693_s29, 7 }
  0x1d   : > { %s3735_s27 = scalar_lea.vmem %s4048_s12, %s3205_s24  ;;  %s4073_s0 = sld [smem:[#allocation8_spill]] (!%p3147_p4) }
  0x1e   : > { %v741_v0 = vld [vmem:[%s4072_s25 + $0x8] sm:$0xff]  ;;  %v740_v1 = vld [vmem:[%s4072_s25] sm:$0xff]  ;;  %vm749_vm0 = vcmask 130048   ;;  %s4074_s2 = sld [smem:[#allocation10_spill]]  ;;  %vm834_vm1 = vcmask 261120  }
  0x1f   : > { %3289 = vmatprep.subr.mxu0 %v741_v0  ;;  %v831_v6 = vld [vmem:[%s4039_s3] sm:$0xff] }
  0x20   : > { %3290 = vmatpush3.msra.mxu0 %v741_v0 }
  0x21   : > { %3291 = vmatprep.subr.mxu0 %v740_v1 }
  0x22   : > { %3292 = vmatpush3.msra.mxu0 %v740_v1 }
  0x23   : > { %v738_v2 = vld [vmem:[%s4073_s0] sm:$0xff]  ;;  %v739_v3 = vld [vmem:[%s4073_s0 + $0x8] sm:$0xff] }
  0x24   : > { %3293 = vmatprep.mubr.msk.f32.mxu0 %vm749_vm0, %v738_v2  ;;  %v3148_v4 = vld [vmem:[%s4074_s2] ss:$0 sm:$0xff] }
  0x25   : > { %3294 = vmatmul.mubr.msk.f32.vlgmr.msra.gmra.mxu0 %vm749_vm0, %v739_v3 }
  0xe5   : > { %v3295_v5 = vpop.f32.mrf.mxu0 }
  0xe6   : > { %v828_v7 = vadd.f32 %v3295_v5, %v3148_v4 }
  0xe7   : > { %v822_v8 = vpop.f32.mrf.mxu0 }
  0xe8   : > { %v833_v9 = vadd.f32 %v831_v6, %v828_v7  ;;  %v823_v10 = vadd.f32 %v3148_v4, %v822_v8 }
  0xea   : > { %836 = vst.msk [vmem:[#allocation2 + $0x8] sm:$0xff] %vm834_vm1, %v833_v9  ;;  %v832_v11 = vadd.f32 %v831_v6, %v823_v10 }
  0xec   : > { %835 = vst.msk [vmem:[#allocation2] sm:$0xff] %vm834_vm1, %v832_v11 }
  0xed PF: > { %v842_v12 = vld [vmem:[%s3703_s22 + $0x18] sm:$0xff]  ;;  %v841_v13 = vld [vmem:[%s3703_s22 + $0x10] sm:$0xff]  ;;  %vm850_vm2 = vcmask 261120   ;;  %v840_v15 = vld [vmem:[%s3703_s22 + $0x8] sm:$0xff]  ;;  %v3570_v18 = vmov 0.0   ;;  %vm3571_vm3 = vmmov 0   ;;  %s4075_s17 = scalar_lea.vmem %s4041_s5, %s3693_s29 }
  0xee   : > { %3296 = vmatprep.subr.mxu0 %v842_v12  ;;  %v839_v16 = vld [vmem:[%s3703_s22] sm:$0xff]  ;;  %3332 = vmatprep.subr.mxu1 %v3570_v18  ;;  %s3572_s18 = smov 96   ;;  %vm939_vm4 = vcmask 64512   ;;  %s3573_s1 = smov 64  }
  0xef   : > { %3297 = vmatpush3.msra.mxu0 %v842_v12  ;;  %3334 = vmatprep.mubr.msk.f32.mxu1 %vm3571_vm3, %v3570_v18  ;;  %v3151_v20 = vld [vmem:[%s4075_s17] ss:$0 sm:$0xff]  ;;  %s3574_s19 = smov 88   ;;  %s3575_s30 = smov 120  }
  0xf0   : > { %3298 = vmatprep.subr.mxu0 %v841_v13  ;;  %s3576_s21 = smov 56   ;;  %s3577_s2 = smov 112  }
  0xf1   : > { %3299 = vmatpush3.msra.mxu0 %v841_v13  ;;  %v3776_v17 = vld [vmem:[#allocation2 + $0x8] sm:$0xff]  ;;  %s4076_s23 = sld [smem:[#allocation7_spill]]  ;;  %s3578_s24 = smov 80  }
  0xf2   : > { %3300 = vmatprep.subr.mxu0 %v840_v15  ;;  %s3579_s22 = smov 48   ;;  %s3580_s26 = smov 72  }
  0xf3   : > { %v3770_v14 = vld [vmem:[#allocation2] sm:$0xff]  ;;  %3301 = vmatpush3.msra.mxu0 %v840_v15  ;;  %s3581_s17 = smov 104   ;;  %p3195_p5 = scmp.ne.s32.totalorder %s3687_s28, 1 }
  0xf4   : > { %3304 = vmatprep.mubr.msk.f32.mxu0 %vm850_vm2, %v3770_v14  ;;  %3302 = vmatprep.subr.mxu0 %v839_v16 }
  0xf5   : > { %3303 = vmatpush3.msra.mxu0 %v839_v16 }
  0xf6   : > { %3305 = vmatmul.mubr.msk.f32.vlgmr.msra.gmra.mxu0 %vm850_vm2, %v3776_v17  ;;  %3307 = vmatprep.subr.mxu0 %v3570_v18 }
  0xf7   : > { %3309 = vmatprep.mubr.msk.f32.mxu0 %vm3571_vm3, %v3570_v18  ;;  %v932_v16 = vld [vmem:[%s4076_s23] sm:$0xff] }
 0x1b6   : > { %v3306_v19 = vpop.f32.mrf.mxu0 }
 0x1b7   : > { %v3794_v23 = vadd.f32 %v3306_v19, %v3151_v20 }
 0x1b8   : > { %v923_v21 = vpop.f32.mrf.mxu0 }
 0x1b9   : > { %v3791_v22 = vadd.f32 %v3151_v20, %v923_v21 }
 0x1bb   : > { %937 = vrot.lane.b32.xlu0 %v3791_v22, %s3572_s18 }
 0x1bf   : > { %1015 = vrot.lane.b32.xlu0 %v3794_v23, %s3572_s18  ;;  %s3582_s18 = smov 40  }
 0x22d   : > { %v938_v24 = vpop.permute.xlu0 %937 }
 0x22e   : > { %3308 = vmatpush3.xpose.msk.msra.mxu0 %vm939_vm4, %v938_v24 }
 0x22f   : > { %3312 = vmatprep.subr.mxu0 %v3570_v18 }
 0x231   : > { %3310 = vmatmul.mubr.msk.f32.vlgmr.msra.gmra.mxu0 %vm939_vm4, %v3791_v22  ;;  %v1016_v25 = vpop.permute.xlu0 %1015 }
 0x232   : > { %3313 = vmatpush3.xpose.msk.msra.mxu0 %vm939_vm4, %v1016_v25  ;;  %3314 = vmatprep.mubr.msk.f32.mxu0 %vm3571_vm3, %v3570_v18 }
 0x233   : > { %3317 = vmatprep.subr.mxu0 %v3570_v18 }
 0x235   : > { %3315 = vmatmul.mubr.msk.f32.vlgmr.msra.gmra.mxu0 %vm939_vm4, %v3794_v23 }
 0x236   : > { %3319 = vmatprep.mubr.msk.f32.mxu0 %vm3571_vm3, %v3570_v18 }
 0x2f1   : > { %v1010_v26 = vpop.f32.mrf.mxu0 }
 0x2f2   : > { %v1091_v27 = vmul.f32 0.35355338, %v1010_v26 }
 0x2f3   : > { %v3311_v28 = vpop.f32.mrf.mxu0 }
 0x2f4   : > { %v1093_v29 = vsel %vm939_vm4, %v1091_v27, -inf }
 0x2f5   : > { %1094 = vmax.xlane.f32.xlu1 %v1093_v29  ;;  %v1087_v30 = vpop.f32.mrf.mxu0 }
 0x2f6   : > { %v1092_v31 = vmul.f32 0.35355338, %v1087_v30 }
 0x2f7   : > { %v3316_v32 = vpop.f32.mrf.mxu0 }
 0x2f8   : > { %v1096_v33 = vsel %vm939_vm4, %v1092_v31, -inf }
 0x2f9   : > { %1097 = vmax.xlane.f32.xlu1 %v1096_v33 }
 0x30a   : > { %1115 = vrot.lane.b32.xlu1 %v3791_v22, %s3573_s1 }
 0x30e   : > { %1191 = vrot.lane.b32.xlu1 %v3794_v23, %s3573_s1  ;;  %s4082_s1 = sld [smem:[#allocation14_spill]] (!%p3195_p5) }
 0x312   : > { %1269 = vrot.lane.b32.xlu1 %v3791_v22, %s3574_s19 }
 0x316   : > { %1347 = vrot.lane.b32.xlu1 %v3794_v23, %s3574_s19 }
 0x37e   : > { %v1095_v34 = vpop.xlane.xlu1 %1094 }
 0x37f   : > { %v1099_v35 = vsub.f32 %v1091_v27, %v1095_v34 }
 0x381   : > { %v1101_v36 = vmul.f32 1.442695, %v1099_v35 }
 0x382   : > { %v1098_v37 = vpop.xlane.xlu1 %1097 }
 0x383   : > { %3494 = vpow2.f32 %v1101_v36  ;;  %v1100_v38 = vsub.f32 %v1092_v31, %v1098_v37  ;;  %v933_v31 = vld [vmem:[%s4076_s23 + $0x8] sm:$0xff] }
 0x385   : > { %v1103_v39 = vmul.f32 1.442695, %v1100_v38 }
 0x386   : > { %v1116_v40 = vpop.permute.xlu1 %1115 }
 0x387   : > { %3496 = vpow2.f32 %v1103_v39  ;;  %3318 = vmatpush3.msra.mxu0 %v1116_v40 }
 0x388   : > { %3322 = vmatprep.subr.mxu0 %v3570_v18 }
 0x38a   : > { %v1192_v41 = vpop.permute.xlu1 %1191 }
 0x38e   : > { %v1270_v42 = vpop.permute.xlu1 %1269 }
 0x390   : > { %v3495_v43 = vpop.eup %3494 }
 0x391   : > { %v1105_v44 = vsel %vm939_vm4, %v3495_v43, 0.0 }
 0x392   : > { %1106 = vadd.xlane.f32.xlu0 %v1105_v44  ;;  %v1348_v45 = vpop.permute.xlu1 %1347 }
 0x393   : > { %3333 = vmatpush3.xpose.msk.msra.mxu1 %vm939_vm4, %v1348_v45 }
 0x394   : > { %v3497_v46 = vpop.eup %3496  ;;  %3342 = vmatprep.subr.mxu1 %v3570_v18 }
 0x395   : > { %v1108_v47 = vsel %vm939_vm4, %v3497_v46, 0.0 }
 0x396   : > { %1109 = vadd.xlane.f32.xlu1 %v1108_v47 }
 0x3a7   : > { %1345 = vrot.lane.b32.xlu1 %v3794_v23, %s3575_s30 }
 0x3a8   : > { %1267 = vrot.lane.b32.xlu0 %v3791_v22, %s3575_s30  ;;  %s4077_s30 = scalar_lea.vmem %s4043_s7, %s3693_s29 }
 0x41b   : > { %v1107_v48 = vpop.xlane.xlu0 %1106 }
 0x41c   : > { %3498 = vrcp.f32 %v1107_v48 }
 0x41f   : > { %v1110_v49 = vpop.xlane.xlu1 %1109  ;;  %v1268_v55 = vpop.permute.xlu0 %1267 }
 0x420   : > { %3500 = vrcp.f32 %v1110_v49 }
 0x423   : > { %v1346_v50 = vpop.permute.xlu1 %1345 }
 0x424   : > { %3335 = vmatmul.mubr.msk.f32.vlgmr.msra.gmra.mxu1 %vm939_vm4, %v1346_v50 }
 0x425   : > { %3344 = vmatprep.mubr.msk.f32.mxu1 %vm3571_vm3, %v3570_v18 }
 0x429   : > { %v3499_v51 = vpop.eup %3498 }
 0x42a   : > { %v1113_v52 = vmul.f32 %v3499_v51, %v3495_v43 }
 0x42c   : > { %3320 = vmatmul.mubr.msk.f32.vlgmr.msra.gmra.mxu0 %vm939_vm4, %v1113_v52 }
 0x42d   : > { %v3501_v53 = vpop.eup %3500  ;;  %3323 = vmatpush3.msra.mxu0 %v1192_v41  ;;  %3324 = vmatprep.mubr.msk.f32.mxu0 %vm3571_vm3, %v3570_v18 }
 0x42e   : > { %3327 = vmatprep.subr.mxu0 %v3570_v18  ;;  %v1114_v54 = vmul.f32 %v3501_v53, %v3497_v46 }
 0x430   : > { %3325 = vmatmul.mubr.msk.f32.vlgmr.msra.gmra.mxu0 %vm939_vm4, %v1114_v54 }
 0x431   : > { %3328 = vmatpush3.xpose.msk.msra.mxu0 %vm939_vm4, %v1270_v42  ;;  %3329 = vmatprep.mubr.msk.f32.mxu0 %vm3571_vm3, %v3570_v18 }
 0x432   : > { %3337 = vmatprep.subr.mxu0 %v3570_v18 }
 0x434   : > { %3330 = vmatmul.mubr.msk.f32.vlgmr.msra.gmra.mxu0 %vm939_vm4, %v1268_v55 }
 0x435   : > { %3339 = vmatprep.mubr.msk.f32.mxu0 %vm3571_vm3, %v3570_v18 }
 0x4e4   : > { %v1419_v56 = vpop.f32.mrf.mxu1 }
 0x4e5   : > { %v1424_v57 = vmul.f32 0.35355338, %v1419_v56 }
 0x4e6   : > { %v3336_v58 = vpop.f32.mrf.mxu1 }
 0x4e7   : > { %v1428_v59 = vsel %vm939_vm4, %v1424_v57, -inf }
 0x4e8   : > { %1429 = vmax.xlane.f32.xlu0 %v1428_v59 }
 0x4ec   : > { %v1187_v60 = vpop.f32.mrf.mxu0 }
 0x4ee   : > { %v3321_v61 = vpop.f32.mrf.mxu0 }
 0x4f0   : > { %v1263_v62 = vpop.f32.mrf.mxu0 }
 0x4f2   : > { %v3326_v63 = vpop.f32.mrf.mxu0 }
 0x4f4   : > { %v1341_v0 = vpop.f32.mrf.mxu0 }
 0x4f5   : > { %v1423_v1 = vmul.f32 0.35355338, %v1341_v0 }
 0x4f6   : > { %v3331_v2 = vpop.f32.mrf.mxu0 }
 0x4f7   : > { %v1425_v3 = vsel %vm939_vm4, %v1423_v1, -inf }
 0x4f8   : > { %1426 = vmax.xlane.f32.xlu1 %v1425_v3 }
 0x4fe   : > { %1523 = vrot.lane.b32.xlu0 %v3794_v23, %s3576_s21 }
 0x502   : > { %1761 = vrot.lane.b32.xlu0 %v3791_v22, %s3577_s2 }
 0x571   : > { %v1430_v4 = vpop.xlane.xlu0 %1429 }
 0x572   : > { %v1432_v5 = vsub.f32 %v1424_v57, %v1430_v4 }
 0x574   : > { %v1435_v6 = vmul.f32 1.442695, %v1432_v5  ;;  %v934_v5 = vld [vmem:[%s4076_s23 + $0x10] sm:$0xff] }
 0x575   : > { %v1524_v7 = vpop.permute.xlu0 %1523 }
 0x576   : > { %3502 = vpow2.f32 %v1435_v6  ;;  %3343 = vmatpush3.msra.mxu1 %v1524_v7 }
 0x577   : > { %3352 = vmatprep.subr.mxu1 %v932_v16 }
 0x579   : > { %v1762_v42 = vpop.permute.xlu0 %1761 }
 0x581   : > { %v1427_v8 = vpop.xlane.xlu1 %1426 }
 0x582   : > { %v1431_v9 = vsub.f32 %v1423_v1, %v1427_v8 }
 0x583   : > { %v3503_v10 = vpop.eup %3502 }
 0x584   : > { %v1433_v11 = vmul.f32 1.442695, %v1431_v9  ;;  %v1440_v12 = vsel %vm939_vm4, %v3503_v10, 0.0 }
 0x585   : > { %1441 = vadd.xlane.f32.xlu1 %v1440_v12 }
 0x586   : > { %3504 = vpow2.f32 %v1433_v11 }
 0x593   : > { %v3505_v13 = vpop.eup %3504 }
 0x594   : > { %v1437_v15 = vsel %vm939_vm4, %v3505_v13, 0.0 }
 0x595   : > { %1438 = vadd.xlane.f32.xlu1 %v1437_v15 }
 0x5a6   : > { %1447 = vrot.lane.b32.xlu1 %v3791_v22, %s3576_s21 }
 0x5aa   : > { %1763 = vrot.lane.b32.xlu1 %v3791_v22, %s3578_s24 }
 0x5ae   : > { %1841 = vrot.lane.b32.xlu1 %v3794_v23, %s3578_s24 }
 0x5b2   : > { %1839 = vrot.lane.b32.xlu1 %v3794_v23, %s3577_s2  ;;  %s4078_s2 = scalar_lea.vmem %s4044_s8, %s3693_s29 }
 0x60e   : > { %v1442_v19 = vpop.xlane.xlu1 %1441 }
 0x60f   : > { %3506 = vrcp.f32 %v1442_v19 }
 0x61c   : > { %v3507_v20 = vpop.eup %3506 }
 0x61d   : > { %v1446_v21 = vmul.f32 %v3507_v20, %v3503_v10 }
 0x61e   : > { %v1439_v24 = vpop.xlane.xlu1 %1438 }
 0x61f   : > { %3508 = vrcp.f32 %v1439_v24  ;;  %3345 = vmatmul.mubr.msk.f32.vlgmr.msra.gmra.mxu1 %vm939_vm4, %v1446_v21 }
 0x620   : > { %3354 = vmatprep.mubr.msk.f32.mxu1 %vm939_vm4, %v1187_v60  ;;  %3353 = vmatpush3.msra.mxu1 %v932_v16 }
 0x621   : > { %3362 = vmatprep.subr.mxu1 %v3570_v18 }
 0x622   : > { %v1448_v25 = vpop.permute.xlu1 %1447 }
 0x623   : > { %3338 = vmatpush3.msra.mxu0 %v1448_v25  ;;  %3355 = vmatmul.mubr.msk.f32.vlgmr.msra.gmra.mxu1 %vm939_vm4, %v1263_v62 }
 0x624   : > { %3364 = vmatprep.mubr.msk.f32.mxu1 %vm3571_vm3, %v3570_v18  ;;  %3347 = vmatprep.subr.mxu0 %v933_v31 }
 0x626   : > { %v1764_v26 = vpop.permute.xlu1 %1763 }
 0x62a   : > { %v1842_v27 = vpop.permute.xlu1 %1841 }
 0x62b   : > { %3363 = vmatpush3.xpose.msk.msra.mxu1 %vm939_vm4, %v1842_v27 }
 0x62c   : > { %v3509_v28 = vpop.eup %3508  ;;  %3372 = vmatprep.subr.mxu1 %v3570_v18 }
 0x62d   : > { %v1445_v29 = vmul.f32 %v3509_v28, %v3505_v13 }
 0x62e   : > { %v1840_v30 = vpop.permute.xlu1 %1839 }
 0x62f   : > { %3340 = vmatmul.mubr.msk.f32.vlgmr.msra.gmra.mxu0 %vm939_vm4, %v1445_v29  ;;  %3365 = vmatmul.mubr.msk.f32.vlgmr.msra.gmra.mxu1 %vm939_vm4, %v1840_v30 }
 0x630   : > { %3374 = vmatprep.mubr.msk.f32.mxu1 %vm3571_vm3, %v3570_v18  ;;  %3348 = vmatpush3.msra.mxu0 %v933_v31 }
 0x631   : > { %3357 = vmatprep.subr.mxu0 %v3570_v18 }
 0x6df   : > { %v1595_v32 = vpop.f32.mrf.mxu1 }
 0x6e1   : > { %v3346_v33 = vpop.f32.mrf.mxu1 }
 0x6e3   : > { %v3862_v34 = vpop.f32.mrf.mxu1 }
 0x6e5   : > { %v3864_v35 = vpop.f32.mrf.mxu1 }
 0x6ef   : > { %v1519_v36 = vpop.f32.mrf.mxu0  ;;  %v1913_v37 = vpop.f32.mrf.mxu1 }
 0x6f0   : > { %v1918_v38 = vmul.f32 0.35355338, %v1913_v37  ;;  %3349 = vmatprep.mubr.msk.f32.mxu0 %vm939_vm4, %v1519_v36 }
 0x6f1   : > { %v3341_v39 = vpop.f32.mrf.mxu0  ;;  %3350 = vmatmul.mubr.msk.f32.vlgmr.msra.gmra.mxu0 %vm939_vm4, %v1595_v32  ;;  %v3366_v40 = vpop.f32.mrf.mxu1 }
 0x6f2   : > { %3358 = vmatpush3.xpose.msk.msra.mxu0 %vm939_vm4, %v1764_v26  ;;  %v1922_v41 = vsel %vm939_vm4, %v1918_v38, -inf  ;;  %3359 = vmatprep.mubr.msk.f32.mxu0 %vm3571_vm3, %v3570_v18 }
 0x6f3   : > { %1923 = vmax.xlane.f32.xlu1 %v1922_v41  ;;  %3367 = vmatprep.subr.mxu0 %v3570_v18 }
 0x6f5   : > { %3360 = vmatmul.mubr.msk.f32.vlgmr.msra.gmra.mxu0 %vm939_vm4, %v1762_v42 }
 0x6f6   : > { %3369 = vmatprep.mubr.msk.f32.mxu0 %vm3571_vm3, %v3570_v18 }
 0x704   : > { %1941 = vrot.lane.b32.xlu1 %v3791_v22, %s3579_s22 }
 0x708   : > { %2178 = vrot.lane.b32.xlu1 %v3791_v22, %s3580_s26 }
 0x70c   : > { %2256 = vrot.lane.b32.xlu1 %v3794_v23, %s3580_s26 }
 0x710   : > { %2254 = vrot.lane.b32.xlu1 %v3794_v23, %s3581_s17 }
 0x77c   : > { %v1924_v43 = vpop.xlane.xlu1 %1923 }
 0x77d   : > { %v1926_v45 = vsub.f32 %v1918_v38, %v1924_v43 }
 0x77f   : > { %v1929_v46 = vmul.f32 1.442695, %v1926_v45 }
 0x780   : > { %v1942_v44 = vpop.permute.xlu1 %1941 }
 0x781   : > { %3368 = vmatpush3.msra.mxu0 %v1942_v44  ;;  %3510 = vpow2.f32 %v1929_v46 }
 0x782   : > { %3377 = vmatprep.subr.mxu0 %v934_v5 }
 0x784   : > { %v2179_v1 = vpop.permute.xlu1 %2178 }
 0x788   : > { %v2257_v12 = vpop.permute.xlu1 %2256 }
 0x78c   : > { %v2255_v16 = vpop.permute.xlu1 %2254 }
 0x78e   : > { %v3511_v53 = vpop.eup %3510 }
 0x78f   : > { %v1934_v54 = vsel %vm939_vm4, %v3511_v53, 0.0 }
 0x7b1   : > { %v3880_v47 = vpop.f32.mrf.mxu0 }
 0x7b2   : > { %v1758_v26 = vadd.f32 %v3862_v34, %v3880_v47 }
 0x7b3   : > { %v3882_v48 = vpop.f32.mrf.mxu0 }
 0x7b4   : > { %v1753_v28 = vadd.f32 %v3864_v35, %v3882_v48 }
 0x7b5   : > { %v1835_v49 = vpop.f32.mrf.mxu0 }
 0x7b6   : > { %v1917_v50 = vmul.f32 0.35355338, %v1835_v49 }
 0x7b7   : > { %v3361_v51 = vpop.f32.mrf.mxu0 }
 0x7b8   : > { %v1919_v52 = vsel %vm939_vm4, %v1917_v50, -inf }
 0x7b9   : > { %1920 = vmax.xlane.f32.xlu0 %v1919_v52  ;;  %v3186_v52 = vld [vmem:[%s4077_s30] ss:$0 sm:$0xff] }
 0x7bd   : > { %1935 = vadd.xlane.f32.xlu0 %v1934_v54 }
 0x842   : > { %v1921_v55 = vpop.xlane.xlu0 %1920 }
 0x843   : > { %v1925_v56 = vsub.f32 %v1917_v50, %v1921_v55 }
 0x845   : > { %v1927_v57 = vmul.f32 1.442695, %v1925_v56 }
 0x846   : > { %v1936_v60 = vpop.xlane.xlu0 %1935 }
 0x847   : > { %3512 = vpow2.f32 %v1927_v57 }
 0x848   : > { %3514 = vrcp.f32 %v1936_v60 }
 0x854   : > { %v3513_v58 = vpop.eup %3512 }
 0x855   : > { %v1931_v59 = vsel %vm939_vm4, %v3513_v58, 0.0  ;;  %v3515_v62 = vpop.eup %3514 }
 0x856   : > { %1932 = vadd.xlane.f32.xlu0 %v1931_v59  ;;  %v1940_v0 = vmul.f32 %v3515_v62, %v3511_v53 }
 0x86c   : > { %2017 = vrot.lane.b32.xlu0 %v3794_v23, %s3579_s22  ;;  %s4079_s22 = scalar_lea.vmem %s4045_s9, %s3693_s29 }
 0x870   : > { %2176 = vrot.lane.b32.xlu0 %v3791_v22, %s3581_s17 }
 0x8df   : > { %v1933_v61 = vpop.xlane.xlu0 %1932 }
 0x8e0   : > { %3516 = vrcp.f32 %v1933_v61 }
 0x8e3   : > { %v2018_v63 = vpop.permute.xlu0 %2017 }
 0x8e4   : > { %3373 = vmatpush3.msra.mxu1 %v2018_v63 }
 0x8e5   : > { %3375 = vmatmul.mubr.msk.f32.vlgmr.msra.gmra.mxu1 %vm939_vm4, %v1940_v0  ;;  %3382 = vmatprep.subr.mxu1 %v3570_v18 }
 0x8e6   : > { %3383 = vmatpush3.xpose.msk.msra.mxu1 %vm939_vm4, %v2179_v1  ;;  %3384 = vmatprep.mubr.msk.f32.mxu1 %vm3571_vm3, %v3570_v18 }
 0x8e7   : > { %v2177_v2 = vpop.permute.xlu0 %2176  ;;  %3392 = vmatprep.subr.mxu1 %v3570_v18 }
 0x8e9   : > { %3385 = vmatmul.mubr.msk.f32.vlgmr.msra.gmra.mxu1 %vm939_vm4, %v2177_v2 }
 0x8ea   : > { %3394 = vmatprep.mubr.msk.f32.mxu1 %vm3571_vm3, %v3570_v18 }
 0x8ed   : > { %v3517_v3 = vpop.eup %3516 }
 0x8ee   : > { %v1939_v4 = vmul.f32 %v3517_v3, %v3513_v58 }
 0x8f0   : > { %3370 = vmatmul.mubr.msk.f32.vlgmr.msra.gmra.mxu0 %vm939_vm4, %v1939_v4 }
 0x8f1   : > { %3378 = vmatpush3.msra.mxu0 %v934_v5 }
 0x8f2   : > { %3387 = vmatprep.subr.mxu0 %v3570_v18 }
 0x9a5   : > { %v2089_v6 = vpop.f32.mrf.mxu1 }
 0x9a7   : > { %v3376_v7 = vpop.f32.mrf.mxu1 }
 0x9a8   : > { %v2649_v7 = vld [vmem:[%s3725_s4 + $0x10] sm:$0xff] }
 0x9a9   : > { %v2250_v8 = vpop.f32.mrf.mxu1 }
 0x9aa   : > { %v2332_v9 = vmul.f32 0.35355338, %v2250_v8  ;;  %v2648_v8 = vld [vmem:[%s3725_s4 + $0x8] sm:$0xff] }
 0x9ab   : > { %v3386_v10 = vpop.f32.mrf.mxu1 }
 0x9ac   : > { %v2334_v11 = vsel %vm939_vm4, %v2332_v9, -inf  ;;  %v2756_v10 = vld [vmem:[%s3735_s27 + $0x78] sm:$0xff] }
 0x9ad   : > { %2335 = vmax.xlane.f32.xlu0 %v2334_v11  ;;  %v2755_v11 = vld [vmem:[%s3735_s27 + $0x70] sm:$0xff] }
 0x9b0   : > { %v2013_v13 = vpop.f32.mrf.mxu0 }
 0x9b1   : > { %3379 = vmatprep.mubr.msk.f32.mxu0 %vm939_vm4, %v2013_v13  ;;  %v2753_v13 = vld [vmem:[%s3735_s27 + $0x60] sm:$0xff] }
 0x9b2   : > { %v3371_v15 = vpop.f32.mrf.mxu0  ;;  %3380 = vmatmul.mubr.msk.f32.vlgmr.msra.gmra.mxu0 %vm939_vm4, %v2089_v6  ;;  %v2650_v6 = vld [vmem:[%s3725_s4 + $0x18] sm:$0xff] }
 0x9b3   : > { %3388 = vmatpush3.xpose.msk.msra.mxu0 %vm939_vm4, %v2257_v12  ;;  %3389 = vmatprep.mubr.msk.f32.mxu0 %vm3571_vm3, %v3570_v18  ;;  %v2754_v12 = vld [vmem:[%s3735_s27 + $0x68] sm:$0xff]  ;;  %v2752_v15 = vld [vmem:[%s3735_s27 + $0x58] sm:$0xff] }
 0x9b4   : > { %3397 = vmatprep.subr.mxu0 %v3570_v18 }
 0x9b6   : > { %3390 = vmatmul.mubr.msk.f32.vlgmr.msra.gmra.mxu0 %vm939_vm4, %v2255_v16  ;;  %v2751_v16 = vld [vmem:[%s3735_s27 + $0x50] sm:$0xff] }
 0x9b7   : > { %3399 = vmatprep.mubr.msk.f32.mxu0 %vm3571_vm3, %v3570_v18 }
 0xa36   : > { %v2336_v19 = vpop.xlane.xlu0 %2335 }
 0xa37   : > { %v2340_v20 = vsub.f32 %v2332_v9, %v2336_v19  ;;  %v2647_v9 = vld [vmem:[%s3725_s4] sm:$0xff]  ;;  %v2750_v19 = vld [vmem:[%s3735_s27 + $0x48] sm:$0xff] }
 0xa39   : > { %v2342_v21 = vmul.f32 1.442695, %v2340_v20  ;;  %v2749_v20 = vld [vmem:[%s3735_s27 + $0x40] sm:$0xff] }
 0xa3b   : > { %3518 = vpow2.f32 %v2342_v21  ;;  %v2748_v21 = vld [vmem:[%s3735_s27 + $0x38] sm:$0xff] }
 0xa48   : > { %v3519_v24 = vpop.eup %3518 }
 0xa49   : > { %v2346_v25 = vsel %vm939_vm4, %v3519_v24, 0.0 }
 0xa4a   : > { %2347 = vadd.xlane.f32.xlu0 %v2346_v25  ;;  %v2746_v25 = vld [vmem:[%s3735_s27 + $0x28] sm:$0xff] }
 0xa72   : > { %v3381_v27 = vpop.f32.mrf.mxu0 }
 0xa73   : > { %v2175_v29 = vadd.f32 %v3381_v27, %v1758_v26  ;;  %v2745_v26 = vld [vmem:[%s3735_s27 + $0x20] sm:$0xff] }
 0xa74   : > { %v2165_v30 = vpop.f32.mrf.mxu0 }
 0xa75   : > { %v2174_v31 = vadd.f32 %v2165_v30, %v1753_v28 }
 0xa76   : > { %v2328_v32 = vpop.f32.mrf.mxu0 }
 0xa77   : > { %v2333_v18 = vmul.f32 0.35355338, %v2328_v32 }
 0xa78   : > { %v3391_v33 = vpop.f32.mrf.mxu0 }
 0xa79   : > { %v2337_v36 = vsel %vm939_vm4, %v2333_v18, -inf  ;;  %v3187_v33 = vld [vmem:[%s4078_s2] ss:$0 sm:$0xff]  ;;  %s4081_s2 = sld [smem:[#allocation13_spill]] (!%p3195_p5) }
 0xa7a   : > { %2338 = vmax.xlane.f32.xlu1 %v2337_v36 }
 0xa8b   : > { %2356 = vrot.lane.b32.xlu1 %v3791_v22, %s3582_s18  ;;  %v935_v22 = vld [vmem:[%s4076_s23 + $0x18] sm:$0xff] }
 0xad3   : > { %v2348_v37 = vpop.xlane.xlu0 %2347 }
 0xad4   : > { %3520 = vrcp.f32 %v2348_v37 }
 0xae1   : > { %v3521_v38 = vpop.eup %3520 }
 0xae2   : > { %v2354_v41 = vmul.f32 %v3521_v38, %v3519_v24  ;;  %v2747_v24 = vld [vmem:[%s3735_s27 + $0x30] sm:$0xff] }
 0xb03   : > { %v2339_v34 = vpop.xlane.xlu1 %2338 }
 0xb04   : > { %v2341_v39 = vsub.f32 %v2333_v18, %v2339_v34 }
 0xb06   : > { %v2344_v40 = vmul.f32 1.442695, %v2341_v39  ;;  %v3188_v39 = vld [vmem:[%s4079_s22] ss:$0 sm:$0xff] }
 0xb07   : > { %v2357_v35 = vpop.permute.xlu1 %2356 }
 0xb08   : > { %3522 = vpow2.f32 %v2344_v40  ;;  %3393 = vmatpush3.msra.mxu1 %v2357_v35 }
 0xb09   : > { %3395 = vmatmul.mubr.msk.f32.vlgmr.msra.gmra.mxu1 %vm939_vm4, %v2354_v41  ;;  %3402 = vmatprep.subr.mxu1 %v935_v22 }
 0xb0a   : > { %3403 = vmatpush3.msra.mxu1 %v935_v22  ;;  %v2742_v22 = vld [vmem:[%s3735_s27 + $0x8] sm:$0xff] }
 0xb0b   : > { %3418 = vmatprep.subr.mxu1 %v2756_v10 }
 0xb15   : > { %v3523_v42 = vpop.eup %3522 }
 0xb16   : > { %v2349_v43 = vsel %vm939_vm4, %v3523_v42, 0.0 }
 0xb17   : > { %2350 = vadd.xlane.f32.xlu0 %v2349_v43  ;;  %v2743_v43 = vld [vmem:[%s3735_s27 + $0x10] sm:$0xff] }
 0xb2d   : > { %2432 = vrot.lane.b32.xlu0 %v3794_v23, %s3582_s18 }
 0xba0   : > { %v2351_v44 = vpop.xlane.xlu0 %2350 }
 0xba1   : > { %3524 = vrcp.f32 %v2351_v44  ;;  %v2741_v44 = vld [vmem:[%s3735_s27] sm:$0xff] }
 0xba4   : > { %v2433_v45 = vpop.permute.xlu0 %2432 }
 0xba5   : > { %3398 = vmatpush3.msra.mxu0 %v2433_v45  ;;  %v3189_v45 = vld [vmem:[%s719_s6] ss:$0 sm:$0xff] }
 0xba6   : > { %3407 = vmatprep.subr.mxu0 %v2650_v6 }
 0xbae   : > { %v3525_v46 = vpop.eup %3524 }
 0xbaf   : > { %v2355_v47 = vmul.f32 %v3525_v46, %v3523_v42  ;;  %v2744_v42 = vld [vmem:[%s3735_s27 + $0x18] sm:$0xff]  ;;  %s4080_s27 = scalar_lea.vmem %s4049_s13, %s3693_s29 }
 0xbb1   : > { %3400 = vmatmul.mubr.msk.f32.vlgmr.msra.gmra.mxu0 %vm939_vm4, %v2355_v47 }
 0xbb2   : > { %3408 = vmatpush3.msra.mxu0 %v2650_v6 }
 0xbb3   : > { %3409 = vmatprep.subr.mxu0 %v2649_v7 }
 0xbb4   : > { %3410 = vmatpush3.msra.mxu0 %v2649_v7 }
 0xbb5   : > { %3411 = vmatprep.subr.mxu0 %v2648_v8 }
 0xbb6   : > { %3412 = vmatpush3.msra.mxu0 %v2648_v8 }
 0xbb7   : > { %3413 = vmatprep.subr.mxu0 %v2647_v9 }
 0xbb8   : > { %3414 = vmatpush3.msra.mxu0 %v2647_v9 }
 0xbc9   : > { %v2428_v48 = vpop.f32.mrf.mxu1 }
 0xbca   : > { %3404 = vmatprep.mubr.msk.f32.mxu1 %vm939_vm4, %v2428_v48 }
 0xbcb   : > { %v3396_v49 = vpop.f32.mrf.mxu1 }
 0xc71   : > { %v2504_v50 = vpop.f32.mrf.mxu0 }
 0xc72   : > { %3405 = vmatmul.mubr.msk.f32.vlgmr.msra.gmra.mxu1 %vm939_vm4, %v2504_v50 }
 0xc73   : > { %v3401_v23 = vpop.f32.mrf.mxu0  ;;  %3419 = vmatpush3.msra.mxu1 %v2756_v10 }
 0xc74   : > { %3420 = vmatprep.subr.mxu1 %v2755_v11 }
 0xc75   : > { %3421 = vmatpush3.msra.mxu1 %v2755_v11  ;;  %v3193_v11 = vld [vmem:[%s730_s20] ss:$0 sm:$0xff] }
 0xc76   : > { %3422 = vmatprep.subr.mxu1 %v2754_v12 }
 0xc77   : > { %3423 = vmatpush3.msra.mxu1 %v2754_v12 }
 0xc78   : > { %3424 = vmatprep.subr.mxu1 %v2753_v13 }
 0xc79   : > { %3425 = vmatpush3.msra.mxu1 %v2753_v13 }
 0xc7a   : > { %3426 = vmatprep.subr.mxu1 %v2752_v15 }
 0xc7b   : > { %3427 = vmatpush3.msra.mxu1 %v2752_v15  ;;  %v3194_v15 = vld [vmem:[%s733_s16] ss:$0 sm:$0xff] }
 0xc7c   : > { %3428 = vmatprep.subr.mxu1 %v2751_v16 }
 0xc7d   : > { %3429 = vmatpush3.msra.mxu1 %v2751_v16 }
 0xc7e   : > { %3430 = vmatprep.subr.mxu1 %v2750_v19 }
 0xc7f   : > { %3431 = vmatpush3.msra.mxu1 %v2750_v19 }
 0xc80   : > { %3432 = vmatprep.subr.mxu1 %v2749_v20 }
 0xc81   : > { %3433 = vmatpush3.msra.mxu1 %v2749_v20 }
 0xc82   : > { %3434 = vmatprep.subr.mxu1 %v2748_v21 }
 0xc83   : > { %3435 = vmatpush3.msra.mxu1 %v2748_v21 }
 0xc84   : > { %3436 = vmatprep.subr.mxu1 %v2747_v24 }
 0xc85   : > { %3437 = vmatpush3.msra.mxu1 %v2747_v24 }
 0xc86   : > { %3438 = vmatprep.subr.mxu1 %v2746_v25 }
 0xc87   : > { %3439 = vmatpush3.msra.mxu1 %v2746_v25 }
 0xc88   : > { %3440 = vmatprep.subr.mxu1 %v2745_v26 }
 0xc89   : > { %3441 = vmatpush3.msra.mxu1 %v2745_v26 }
 0xc8a   : > { %3442 = vmatprep.subr.mxu1 %v2744_v42 }
 0xc8b   : > { %3443 = vmatpush3.msra.mxu1 %v2744_v42 }
 0xc8c   : > { %3444 = vmatprep.subr.mxu1 %v2743_v43 }
 0xc8d   : > { %3445 = vmatpush3.msra.mxu1 %v2743_v43 }
 0xc8e   : > { %3446 = vmatprep.subr.mxu1 %v2742_v22 }
 0xc8f   : > { %3447 = vmatpush3.msra.mxu1 %v2742_v22 }
 0xc90   : > { %3448 = vmatprep.subr.mxu1 %v2741_v44 }
 0xc91   : > { %3449 = vmatpush3.msra.mxu1 %v2741_v44 }
 0xd32   : > { %v3406_v51 = vpop.f32.mrf.mxu1 }
 0xd33   : > { %v2590_v53 = vadd.f32 %v3406_v51, %v2175_v29  ;;  %v3192_v51 = vld [vmem:[%s4080_s27] ss:$0 sm:$0xff] }
 0xd34   : > { %v2580_v54 = vpop.f32.mrf.mxu1 }
 0xd35   : > { %v2599_v55 = vadd.f32 %v3186_v52, %v2590_v53  ;;  %v2589_v56 = vadd.f32 %v2580_v54, %v2174_v31 }
 0xd37   : > { %v2598_v57 = vadd.f32 %v3186_v52, %v2589_v56  ;;  %v2601_v58 = vadd.f32 %v2599_v55, %v3776_v17 }
 0xd39   : > { %v2607_v59 = vsel %vm850_vm2, %v2601_v58, 0.0  ;;  %v2600_v60 = vadd.f32 %v2598_v57, %v3770_v14 }
 0xd3a   : > { %2608 = vadd.xlane.f32.xlu0 %v2607_v59 }
 0xd3b   : > { %v2604_v61 = vsel %vm850_vm2, %v2600_v60, 0.0 }
 0xd3c   : > { %2605 = vadd.xlane.f32.xlu1 %v2604_v61 }
 0xdc3   : > { %v2609_v62 = vpop.xlane.xlu0 %2608 }
 0xdc4   : > { %v2612_v63 = vmul.f32 0.03125, %v2609_v62 }
 0xdc5   : > { %v2606_v0 = vpop.xlane.xlu1 %2605 }
 0xdc6   : > { %v3934_v1 = vsub.f32 %v2601_v58, %v2612_v63  ;;  %v2611_v2 = vmul.f32 0.03125, %v2606_v0 }
 0xdc8   : > { %v3936_v3 = vsub.f32 %v2600_v60, %v2611_v2  ;;  %v2616_v17 = vmul.f32 %v3934_v1, %v3934_v1 }
 0xdca   : > { %v2620_v14 = vsel %vm850_vm2, %v2616_v17, 0.0  ;;  %v2615_v4 = vmul.f32 %v3936_v3, %v3936_v3 }
 0xdcb   : > { %2621 = vadd.xlane.f32.xlu0 %v2620_v14 }
 0xdcc   : > { %v2617_v5 = vsel %vm850_vm2, %v2615_v4, 0.0 }
 0xdcd   : > { %2618 = vadd.xlane.f32.xlu1 %v2617_v5 }
 0xe54   : > { %v2622_v27 = vpop.xlane.xlu0 %2621 }
 0xe55   : > { %v2624_v28 = vmul.f32 0.03125, %v2622_v27 }
 0xe56   : > { %v2619_v29 = vpop.xlane.xlu1 %2618 }
 0xe57   : > { %v2626_v30 = vadd.f32 1e-05, %v2624_v28  ;;  %v2623_v31 = vmul.f32 0.03125, %v2619_v29 }
 0xe59   : > { %3526 = vrsqrt.f32 %v2626_v30  ;;  %v2625_v32 = vadd.f32 1e-05, %v2623_v31 }
 0xe5b   : > { %3528 = vrsqrt.f32 %v2625_v32 }
 0xe66   : > { %v3527_v18 = vpop.eup %3526 }
 0xe67   : > { %v2630_v36 = vmul.f32 %v3527_v18, %v3934_v1 }
 0xe68   : > { %v3529_v37 = vpop.eup %3528 }
 0xe69   : > { %v2629_v34 = vmul.f32 %v3529_v37, %v3936_v3  ;;  %v2638_v38 = vmul.f32 %v3187_v33, %v2630_v36 }
 0xe6b   : > { %v2637_v40 = vmul.f32 %v3187_v33, %v2629_v34  ;;  %v2646_v41 = vadd.f32 %v3188_v39, %v2638_v38 }
 0xe6d   : > { %v2645_v35 = vadd.f32 %v3188_v39, %v2637_v40 }
 0xe6f   : > { %3415 = vmatprep.mubr.msk.f32.mxu0 %vm850_vm2, %v2645_v35 }
 0xe70   : > { %3416 = vmatmul.mubr.msk.f32.vlgmr.msra.gmra.mxu0 %vm850_vm2, %v2646_v41 }
 0xf30   : > { %v3417_v46 = vpop.f32.mrf.mxu0 }
 0xf31   : > { %v2736_v47 = vadd.f32 %v3417_v46, %v3189_v45 }
 0xf32   : > { %v2730_v48 = vpop.f32.mrf.mxu0 }
 0xf33   : > { %v2731_v49 = vadd.f32 %v3189_v45, %v2730_v48  ;;  %v2740_v23 = vmax.f32 %v2736_v47, 0.0 }
 0xf35   : > { %v2739_v50 = vmax.f32 %v2731_v49, 0.0 }
 0xf37   : > { %3450 = vmatprep.mubr.f32.mxu1 %v2739_v50 }
 0xf38   : > { %3451 = vmatmul.mubr.f32.vlgmr.msra.gmra.mxu1 %v2740_v23 }
 0xff8   : > { %v3452_v52 = vpop.f32.mrf.mxu1 }
 0xff9   : > { %v2836_v53 = vadd.f32 %v3452_v52, %v3192_v51 }
 0xffa   : > { %v2830_v54 = vpop.f32.mrf.mxu1 }
 0xffb   : > { %v2831_v55 = vadd.f32 %v3192_v51, %v2830_v54  ;;  %v2840_v56 = vadd.f32 %v2836_v53, %v2646_v41 }
 0xffd   : > { %v2846_v57 = vsel %vm850_vm2, %v2840_v56, 0.0  ;;  %v2839_v58 = vadd.f32 %v2831_v55, %v2645_v35 }
 0xffe   : > { %2847 = vadd.xlane.f32.xlu0 %v2846_v57 }
 0xfff   : > { %v2843_v59 = vsel %vm850_vm2, %v2839_v58, 0.0 }
0x1000   : > { %2844 = vadd.xlane.f32.xlu1 %v2843_v59 }
0x1087   : > { %v2848_v60 = vpop.xlane.xlu0 %2847 }
0x1088   : > { %v2850_v61 = vmul.f32 0.03125, %v2848_v60 }
0x1089   : > { %v2845_v62 = vpop.xlane.xlu1 %2844 }
0x108a   : > { %v2852_v63 = vsub.f32 %v2840_v56, %v2850_v61  ;;  %v2849_v0 = vmul.f32 0.03125, %v2845_v62 }
0x108c   : > { %v2851_v1 = vsub.f32 %v2839_v58, %v2849_v0  ;;  %v2854_v2 = vmul.f32 %v2852_v63, %v2852_v63 }
0x108e   : > { %v2858_v3 = vsel %vm850_vm2, %v2854_v2, 0.0  ;;  %v2853_v17 = vmul.f32 %v2851_v1, %v2851_v1 }
0x108f   : > { %2859 = vadd.xlane.f32.xlu0 %v2858_v3 }
0x1090   : > { %v2855_v14 = vsel %vm850_vm2, %v2853_v17, 0.0 }
0x1091   : > { %2856 = vadd.xlane.f32.xlu1 %v2855_v14 }
0x1118   : > { %v2860_v4 = vpop.xlane.xlu0 %2859 }
0x1119   : > { %v2862_v5 = vmul.f32 0.03125, %v2860_v4 }
0x111a   : > { %v2857_v6 = vpop.xlane.xlu1 %2856 }
0x111b   : > { %v2864_v7 = vadd.f32 1e-05, %v2862_v5  ;;  %v2861_v8 = vmul.f32 0.03125, %v2857_v6 }
0x111d   : > { %3530 = vrsqrt.f32 %v2864_v7  ;;  %v2863_v9 = vadd.f32 1e-05, %v2861_v8 }
0x111f   : > { %3532 = vrsqrt.f32 %v2863_v9 }
0x112a   : > { %v3531_v10 = vpop.eup %3530 }
0x112b   : > { %v2868_v12 = vmul.f32 %v3531_v10, %v2852_v63 }
0x112c   : > { %v3533_v13 = vpop.eup %3532 }
0x112d   : > { %v2876_v16 = vmul.f32 %v3193_v11, %v2868_v12  ;;  %v2867_v19 = vmul.f32 %v3533_v13, %v2851_v1 }
0x112f   : > { %v2884_v20 = vadd.f32 %v3194_v15, %v2876_v16  ;;  %v2875_v21 = vmul.f32 %v3193_v11, %v2867_v19  ;;  %2890 = sbr.rel (%p3195_p5) target bundleno = 4609 (0x1201), region = 100 }
0x1131   : > { %2886 = vst.msk [vmem:[#allocation2 + $0x8] sm:$0xff] %vm850_vm2, %v2884_v20  ;;  %v2883_v24 = vadd.f32 %v3194_v15, %v2875_v21 }
0x1133   : > { %2885 = vst.msk [vmem:[#allocation2] sm:$0xff] %vm850_vm2, %v2883_v24 }
0x1134   : > { %v2894_v25 = vld [vmem:[%s4081_s2 + $0x18] sm:$0xff]  ;;  %v3583_v26 = vmov 0.0   ;;  %v2893_v27 = vld [vmem:[%s4081_s2 + $0x10] sm:$0xff]  ;;  %vm3584_vm5 = vmmov 0   ;;  %v2904_v28 = vrot.slane %v2883_v24, 7  ;;  %v2905_v29 = vrot.slane %v2884_v20, 6 }
0x1135   : > { %3453 = vmatprep.subr.mxu0 %v3583_v26  ;;  %3461 = vmatprep.mubr.msk.f32.mxu0 %vm3584_vm5, %v3583_v26  ;;  %v2892_v30 = vld [vmem:[%s4081_s2 + $0x8] sm:$0xff]  ;;  %vm2906_vm6 = vcmask 1041409   ;;  %v2891_v31 = vld [vmem:[%s4081_s2] sm:$0xff] }
0x1136   : > { %3454 = vmatpush3.msra.mxu0 %v2894_v25  ;;  %v2907_v32 = vsel %vm2906_vm6, %v2905_v29, %v2904_v28  ;;  %v3196_v18 = vld [vmem:[%s4082_s1] ss:$0 sm:$0xff] }
0x1137   : > { %3455 = vmatprep.subr.mxu0 %v3583_v26 }
0x1138   : > { %3456 = vmatpush3.msra.mxu0 %v2893_v27 }
0x1139   : > { %3457 = vmatprep.subr.mxu0 %v3583_v26 }
0x113a   : > { %3458 = vmatpush3.msra.mxu0 %v2892_v30 }
0x113b   : > { %3459 = vmatprep.subr.mxu0 %v3583_v26 }
0x113c   : > { %3460 = vmatpush3.msra.mxu0 %v2891_v31 }
0x113d   : > { %3462 = vmatmul.mubr.msk.f32.vlgmr.msra.gmra.mxu0 %vm850_vm2, %v2907_v32 }
0x11fd   : > { %v2976_v33 = vpop.f32.mrf.mxu0 }
0x11fe   : > { %v2977_v36 = vadd.f32 %v3196_v18, %v2976_v33 }
0x11ff   : > { %v3463_v37 = vpop.f32.mrf.mxu0 }
0x1200   : > { %2980 = vst [vmem:[#allocation3] sm:$0x3] %v2977_v36 }
0x1201 PF: > { %p3468_p6 = scmp.eq.s32.totalorder %s3687_s28, 1  ;;  %s3585_s27 = smov [#allocation3]  }
0x1202   : > { %s2988_s6 = sshll.u32 %s3585_s27, 4  ;;  %s2989_s6 = int_to_ptr.vmem [resolvable:$true] %s2988_s6 }
0x1203   : > { %s3534_s19 = scalar_lea.vmem %s2989_s6, 32  ;;  %p3541_p10 = scmp.lt.s32.totalorder %s2989_s6, %s2989_s6 }
0x1204   : > { %p3535_p7 = scmp.ne.s32.totalorder %s2989_s6, %s3534_s19  ;;  %p3542_p11 = scmp.lt.s32.totalorder %s3534_s19, %s3534_s19 }
0x1206   : > { %p3536_p8 = pnand %p3535_p7, %p3468_p6  ;;  %p3543_p12 = por %p3542_p11, %p3541_p10 }
0x1208   : > { %p3537_p9 = pneg %p3536_p8 }
0x120a   : > { %p3544_p13 = pnand %p3543_p12, %p3537_p9 }
0x120c   : > { %3547 = shalt.err (!%p3544_p13)
}
0x120d   : > { %s4083_s20 = sld [smem:[#allocation15_spill]] }
0x1213   : > { %3465 = dma.vmem_to_hbm [thread:$0]  (%p3468_p6), %s2989_s6, 32, %s4083_s20, [#allocation4]  }
0x1214   : > { %3563 = dma.done.wait (%p3468_p6), [#allocation4], 32  }
0x1215   : > { %3565 = vsyncadd (%p3468_p6), [#allocation4], 4294967264 }
0x1216 PF: > { %s4084_s21 = sld [smem:[#allocation6_spill]] }
0x121c   : > { %s29_s27 = sadd.s32 1, %s4084_s21  }
0x121d   : > { %p26_p0 = scmp.ge.s32.totalorder %s29_s27, 4  }
0x121f   :  { %28 = sbr.rel (!%p26_p0) target bundleno = 10 (0xa), region = 160 }
0x1224   :  { %3001 = vsyncpa [#allocation4], 1 }
0x1225   :  { %3003 = vsyncpa [#allocation4 + $0x1], 1 }

</bundles_post_ra>
